<compile_context>
chip_gen: v5e
topology: v5e:2x2
jax: 0.10.0
libtpu: 0.0.40
codegen_flags: <defaults>
</compile_context>

<pallas_src>
import functools

import jax
import jax.numpy as jnp
import numpy as np
from jax.experimental import pallas as pl
from jax.experimental.pallas import tpu as pltpu

EPS = 1e-5
SQRT_HALF = 0.7071067811865476
VMEM_LIMIT = 32 * 1024 * 1024  # explicit scoped-VMEM budget (safe on v5e/v6e/v7x)
NC_TILE = 512                  # classifier-head class tile (multiple of 128)

# (Cin, Cout, K, stride, pad) -- matches the PyTorch module exactly.
CONV_CFG = [
    (3, 64, 7, 4, 3),
    (64, 128, 3, 2, 1),
    (128, 256, 3, 2, 1),
    (256, 512, 3, 2, 1),
]


def _round_up(x, m):
    return ((x + m - 1) // m) * m


# ---------------------------------------------------------------------------
# In-kernel math helpers (elementwise -> VPU/EUP; guaranteed Mosaic lowering).
# ---------------------------------------------------------------------------
def _erf(x):
    # Abramowitz & Stegun 7.1.26, max abs error ~1.5e-7 (exact-GELU semantics).
    a1, a2, a3, a4, a5 = 0.254829592, -0.284496736, 1.421413741, -1.453152027, 1.061405429
    p = 0.3275911
    sign = jnp.where(x >= 0.0, 1.0, -1.0)
    ax = jnp.abs(x)
    t = 1.0 / (1.0 + p * ax)
    poly = ((((a5 * t + a4) * t + a3) * t + a2) * t + a1) * t
    return sign * (1.0 - poly * jnp.exp(-ax * ax))


def _gelu_exact(x):
    # nn.GELU() default (approximate='none'): 0.5*x*(1+erf(x/sqrt(2)))
    return 0.5 * x * (1.0 + _erf(x * SQRT_HALF))


# ---------------------------------------------------------------------------
# GEMM + fused BN/GELU epilogue (used for conv1 via im2col)
# ---------------------------------------------------------------------------
def _gemm_affine_kernel(x_ref, w_ref, scale_ref, shift_ref, o_ref, *, apply_gelu):
    acc = jnp.dot(x_ref[...], w_ref[...], preferred_element_type=jnp.float32)
    y = acc * scale_ref[...] + shift_ref[...]
    if apply_gelu:
        y = _gelu_exact(y)
    o_ref[...] = y.astype(o_ref.dtype)


def gemm_affine(x, w, scale, shift, *, apply_gelu, out_dtype=jnp.bfloat16):
    """x:(M,K) bf16, w:(K,Nc) bf16, scale/shift:(Nc,) f32 -> (M,Nc) out_dtype."""
    M, K = x.shape
    Nc = w.shape[1]

    # Row tiling: big tiles (better HBM roofline / taller MXU panels).
    if M <= 512:
        tm = _round_up(M, 8)
        m_pad = tm
    else:
        tm = 512
        m_pad = _round_up(M, tm)
    if m_pad != M:
        x = jnp.pad(x, ((0, m_pad - M), (0, 0)))

    # Output-channel tiling bounds the resident weight block's VMEM footprint.
    if Nc <= 512:
        tn = Nc
    elif Nc % 512 == 0:
        tn = 512
    elif Nc % 128 == 0:
        tn = 128
    else:
        tn = Nc

    out = pl.pallas_call(
        functools.partial(_gemm_affine_kernel, apply_gelu=apply_gelu),
        out_shape=jax.ShapeDtypeStruct((m_pad, Nc), out_dtype),
        grid=(m_pad // tm, Nc // tn),
        in_specs=[
            pl.BlockSpec((tm, K), lambda i, j: (i, 0)),
            pl.BlockSpec((K, tn), lambda i, j: (0, j)),
            pl.BlockSpec((1, tn), lambda i, j: (0, j)),
            pl.BlockSpec((1, tn), lambda i, j: (0, j)),
        ],
        out_specs=pl.BlockSpec((tm, tn), lambda i, j: (i, j)),
        compiler_params=pltpu.CompilerParams(
            dimension_semantics=("parallel", "parallel"),
            vmem_limit_bytes=VMEM_LIMIT),
    )(x, w,
      scale.reshape(1, Nc).astype(jnp.float32),
      shift.reshape(1, Nc).astype(jnp.float32))
    return out[:M]


# ---------------------------------------------------------------------------
# Direct conv (conv2-4): no materialized im2col.
#   Input is phase-decomposed by the stride and flattened so that each kernel tap
#   (ki,kj) is a contiguous row window of one phase plane; the kernel accumulates
#   KH*KW small (M,Cin)x(Cin,Cout) matmuls into an f32 VMEM scratch, then applies
#   BN+GELU and stores bf16. Rows beyond the valid output width are throwaway and
#   sliced off outside.
# ---------------------------------------------------------------------------
def _conv_tap_kernel(x_ref, w_ref, scale_ref, shift_ref, o_ref, acc_ref,
                     *, stride, kh, kw, wps, mo):
    acc_ref[...] = jnp.zeros_like(acc_ref)
    for ki in range(kh):
        for kj in range(kw):
            p, q = ki % stride, kj % stride
            off = (ki // stride) * wps + (kj // stride)
            xwin = x_ref[0, p, q, pl.ds(off, mo), :]          # (mo, Cin) bf16
            acc_ref[...] += jnp.dot(xwin, w_ref[ki * kw + kj],
                                    preferred_element_type=jnp.float32)
    y = acc_ref[...] * scale_ref[...] + shift_ref[...]
    o_ref[0] = _gelu_exact(y).astype(o_ref.dtype)


def conv_bn_gelu_direct(x_nhwc, w_oihw, scale, shift, stride, pad):
    Cout, Cin, KH, KW = w_oihw.shape
    N, H, W, _ = x_nhwc.shape
    x = x_nhwc.astype(jnp.bfloat16)

    Hp = _round_up(H + 2 * pad, stride)
    Wp = _round_up(W + 2 * pad, stride)
    OH = (H + 2 * pad - KH) // stride + 1
    OW = (W + 2 * pad - KW) // stride + 1
    Hps, Wps = Hp // stride, Wp // stride
    mo = OH * Wps                                             # flattened (padded) output rows
    off_max = ((KH - 1) // stride) * Wps + (KW - 1) // stride
    p_pad = _round_up(max(Hps * Wps, mo + off_max), 8)        # keep all tap windows in-bounds

    # pad -> (N, s, s, Hps*Wps(+pad), Cin) phase planes; one XLA transpose, ~1x input bytes
    xp = jnp.pad(x, ((0, 0), (pad, Hp - H - pad), (pad, Wp - W - pad), (0, 0)))
    xph = xp.reshape(N, Hps, stride, Wps, stride, Cin).transpose(0, 2, 4, 1, 3, 5)
    flat = xph.reshape(N, stride, stride, Hps * Wps, Cin)
    if p_pad > Hps * Wps:
        flat = jnp.pad(flat, ((0, 0), (0, 0), (0, 0), (0, p_pad - Hps * Wps), (0, 0)))

    # (Cout, Cin, KH, KW) -> (KH*KW, Cin, Cout), bf16
    w = jnp.transpose(w_oihw, (2, 3, 1, 0)).reshape(KH * KW, Cin, Cout).astype(jnp.bfloat16)

    out = pl.pallas_call(
        functools.partial(_conv_tap_kernel, stride=stride, kh=KH, kw=KW, wps=Wps, mo=mo),
        out_shape=jax.ShapeDtypeStruct((N, mo, Cout), jnp.bfloat16),
        grid=(N,),
        in_specs=[
            pl.BlockSpec((1, stride, stride, p_pad, Cin), lambda n: (n, 0, 0, 0, 0)),
            pl.BlockSpec((KH * KW, Cin, Cout), lambda n: (0, 0, 0)),
            pl.BlockSpec((1, Cout), lambda n: (0, 0)),
            pl.BlockSpec((1, Cout), lambda n: (0, 0)),
        ],
        out_specs=pl.BlockSpec((1, mo, Cout), lambda n: (n, 0, 0)),
        scratch_shapes=[pltpu.VMEM((mo, Cout), jnp.float32)],
        compiler_params=pltpu.CompilerParams(
            dimension_semantics=("parallel",),
            vmem_limit_bytes=VMEM_LIMIT),
    )(flat, w,
      scale.reshape(1, Cout).astype(jnp.float32),
      shift.reshape(1, Cout).astype(jnp.float32))

    return out.reshape(N, OH, Wps, Cout)[:, :, :OW, :]


# ---------------------------------------------------------------------------
# conv1 via im2col GEMM (Cin=3: per-tap contraction would be too shallow for the MXU)
# ---------------------------------------------------------------------------
def _im2col(x_nhwc, kh, kw, stride, pad):
    N, H, W, C = x_nhwc.shape
    xp = jnp.pad(x_nhwc, ((0, 0), (pad, pad), (pad, pad), (0, 0)))
    OH = (H + 2 * pad - kh) // stride + 1
    OW = (W + 2 * pad - kw) // stride + 1
    patches = []
    for i in range(kh):
        for j in range(kw):
            patches.append(xp[:, i:i + stride * OH:stride, j:j + stride * OW:stride, :])
    cols = jnp.stack(patches, axis=3)                         # (N, OH, OW, kh*kw, C)
    return cols.reshape(N * OH * OW, kh * kw * C), OH, OW


def conv_bn_gelu_im2col(x_nhwc, w_oihw, scale, shift, stride, pad):
    Cout, Cin, KH, KW = w_oihw.shape
    N = x_nhwc.shape[0]
    cols, OH, OW = _im2col(x_nhwc.astype(jnp.bfloat16), KH, KW, stride, pad)
    K = KH * KW * Cin
    Kp = _round_up(K, 128)                                    # 147 -> 256 (zero pad, exact)
    if Kp != K:
        cols = jnp.pad(cols, ((0, 0), (0, Kp - K)))
    w2 = jnp.transpose(w_oihw, (2, 3, 1, 0)).reshape(K, Cout)
    w2 = jnp.pad(w2, ((0, Kp - K), (0, 0))).astype(jnp.bfloat16)
    y = gemm_affine(cols, w2, scale, shift, apply_gelu=True, out_dtype=jnp.bfloat16)
    return y.reshape(N, OH, OW, Cout)


# ---------------------------------------------------------------------------
# Fused head: AdaptiveAvgPool2d((1,1)) + Flatten + Linear in one kernel,
# tiled over the (padded) class dimension. Outputs logits (f32) and feats (f32).
# ---------------------------------------------------------------------------
def _head_kernel(x_ref, w_ref, b_ref, logit_ref, feat_ref, feat_acc, *, inv_s):
    @pl.when(pl.program_id(0) == 0)
    def _():
        f = jnp.sum(x_ref[...].astype(jnp.float32), axis=1) * inv_s   # (N, C) global avg pool
        feat_acc[...] = f
        feat_ref[...] = f
    feats = feat_acc[...].astype(jnp.bfloat16)
    logit_ref[...] = jnp.dot(feats, w_ref[...],
                             preferred_element_type=jnp.float32) + b_ref[...]


def pool_linear_head(x_nsc, lin_w, lin_b):
    """x:(N,S,C) bf16, lin_w:(nc,C), lin_b:(nc,) -> logits (N,nc) f32, feats (N,C) f32."""
    N, S, C = x_nsc.shape
    nc = lin_w.shape[0]
    ncp = _round_up(nc, NC_TILE)                              # lane-dense, VMEM-bounded tiles
    w = jnp.pad(lin_w, ((0, ncp - nc), (0, 0))).T.astype(jnp.bfloat16)   # (C, ncp)
    b = jnp.pad(lin_b, (0, ncp - nc)).reshape(1, ncp).astype(jnp.float32)
    logits, feats = pl.pallas_call(
        functools.partial(_head_kernel, inv_s=1.0 / S),
        out_shape=(jax.ShapeDtypeStruct((N, ncp), jnp.float32),
                   jax.ShapeDtypeStruct((N, C), jnp.float32)),
        grid=(ncp // NC_TILE,),
        in_specs=[
            pl.BlockSpec((N, S, C), lambda j: (0, 0, 0)),
            pl.BlockSpec((C, NC_TILE), lambda j: (0, j)),
            pl.BlockSpec((1, NC_TILE), lambda j: (0, j)),
        ],
        out_specs=(pl.BlockSpec((N, NC_TILE), lambda j: (0, j)),
                   pl.BlockSpec((N, C), lambda j: (0, 0))),
        scratch_shapes=[pltpu.VMEM((N, C), jnp.float32)],
        compiler_params=pltpu.CompilerParams(
            dimension_semantics=("arbitrary",),   # feats block is revisited across j
            vmem_limit_bytes=VMEM_LIMIT),
    )(x_nsc.astype(jnp.bfloat16), w, b)
    return logits[:, :nc], feats


# ---------------------------------------------------------------------------
# Parameters & forward
# ---------------------------------------------------------------------------
def init_params(key, num_classes):
    conv_params = []
    for (cin, cout, k, _s, _p) in CONV_CFG:
        key, k1, k2, k3, k4, k5 = jax.random.split(key, 6)
        fan_in = cin * k * k
        conv_params.append(
            dict(
                w=jax.random.normal(k1, (cout, cin, k, k), jnp.float32) * (2.0 / fan_in) ** 0.5,
                gamma=1.0 + 0.1 * jax.random.normal(k2, (cout,), jnp.float32),
                beta=0.1 * jax.random.normal(k3, (cout,), jnp.float32),
                mean=0.1 * jax.random.normal(k4, (cout,), jnp.float32),
                var=1.0 + 0.1 * jax.random.uniform(k5, (cout,), jnp.float32),
            )
        )
    key, kw, kb = jax.random.split(key, 3)
    lin_w = jax.random.normal(kw, (num_classes, 512), jnp.float32) * (1.0 / 512.0) ** 0.5
    lin_b = 0.01 * jax.random.normal(kb, (num_classes,), jnp.float32)
    return conv_params, (lin_w, lin_b)


def _fold_bn(p):
    scale = p["gamma"] / jnp.sqrt(p["var"] + EPS)
    shift = p["beta"] - p["mean"] * scale
    return scale, shift


def forward(params, x_nchw, return_feats=False):
    conv_params, (lin_w, lin_b) = params
    x = jnp.transpose(x_nchw, (0, 2, 3, 1)).astype(jnp.bfloat16)      # NCHW -> NHWC, bf16

    # conv1: im2col GEMM with fused BN+GELU
    p0 = conv_params[0]
    _, _, _, s0, pad0 = CONV_CFG[0]
    scale, shift = _fold_bn(p0)
    x = conv_bn_gelu_im2col(x, p0["w"], scale, shift, s0, pad0)

    # conv2-4: direct per-tap accumulation (no HBM im2col), fused BN+GELU
    for p, (_ci, _co, _k, stride, pad) in zip(conv_params[1:], CONV_CFG[1:]):
        scale, shift = _fold_bn(p)
        x = conv_bn_gelu_direct(x, p["w"], scale, shift, stride, pad)

    # AdaptiveAvgPool2d((1,1)) + Flatten + Linear fused into one kernel
    N, OH, OW, C = x.shape
    logits, feats = pool_linear_head(x.reshape(N, OH * OW, C), lin_w, lin_b)

    if return_feats:
        norm = jnp.sqrt(jnp.sum(feats * feats, axis=1, keepdims=True))
        feats_n = feats / jnp.maximum(norm, 1e-12)            # F.normalize(p=2, dim=1)
        return logits, feats_n
    return logits


def reference_forward(params, x_nchw):
    """Pure-JAX (XLA, f32) reference with identical semantics, for verification."""
    conv_params, (lin_w, lin_b) = params
    x = jnp.transpose(x_nchw, (0, 2, 3, 1)).astype(jnp.float32)
    for p, (_cin, _cout, _k, stride, pad) in zip(conv_params, CONV_CFG):
        w_hwio = jnp.transpose(p["w"], (2, 3, 1, 0))
        x = jax.lax.conv_general_dilated(
            x, w_hwio, (stride, stride), [(pad, pad), (pad, pad)],
            dimension_numbers=("NHWC", "HWIO", "NHWC"),
            precision=jax.lax.Precision.HIGHEST,
        )
        scale = p["gamma"] / jnp.sqrt(p["var"] + EPS)
        shift = p["beta"] - p["mean"] * scale
        x = jax.nn.gelu(x * scale + shift, approximate=False)
    feats = jnp.mean(x, axis=(1, 2))
    return feats @ lin_w.T + lin_b


if __name__ == "__main__":
    num_classes = 32  # small stand-in for the 7000-way classifier
    key = jax.random.PRNGKey(0)
    pkey, xkey = jax.random.split(key)
    params = init_params(pkey, num_classes)
    x = jax.random.normal(xkey, (2, 3, 32, 32), jnp.float32)  # NCHW like PyTorch

    out = jax.block_until_ready(forward(params, x))
    assert out.shape == (2, num_classes), out.shape

    out2, feats_n = jax.block_until_ready(forward(params, x, return_feats=True))
    assert feats_n.shape == (2, 512)
    np.testing.assert_allclose(np.linalg.norm(np.asarray(feats_n), axis=1), 1.0, rtol=1e-4)

    ref = jax.block_until_ready(reference_forward(params, x))
    # bf16 MXU operands + bf16 inter-layer activations vs an all-f32 reference.
    np.testing.assert_allclose(np.asarray(out), np.asarray(ref), rtol=5e-2, atol=5e-2)

    print("KERNEL_OK")
</pallas_src>

<mosaic_0001>
module attributes {stable_mosaic.version = 11 : i64} {
  func.func @_gemm_affine_kernel(%arg0: i32, %arg1: i32, %arg2: memref<128x256xbf16, #tpu.memory_space<vmem>>, %arg3: memref<256x64xbf16, #tpu.memory_space<vmem>>, %arg4: memref<1x64xf32, #tpu.memory_space<vmem>>, %arg5: memref<1x64xf32, #tpu.memory_space<vmem>>, %arg6: memref<128x64xbf16, #tpu.memory_space<vmem>>) attributes {dimension_semantics = [#tpu.dimension_semantics<parallel>, #tpu.dimension_semantics<parallel>], iteration_bounds = array<i64: 1, 1>, scalar_prefetch = 0 : i64, scratch_operands = 0 : i64, tpu.core_type = #tpu.core_type<tc>, window_params = [{transform_indices = @transform_0, window_bounds = array<i64: 128, 256>}, {transform_indices = @transform_1, window_bounds = array<i64: 256, 64>}, {transform_indices = @transform_2, window_bounds = array<i64: 1, 64>}, {transform_indices = @transform_3, window_bounds = array<i64: 1, 64>}, {transform_indices = @transform_4, window_bounds = array<i64: 128, 64>}]} {
    %c0 = arith.constant 0 : index
    %c0_0 = arith.constant 0 : index
    %0 = vector.load %arg2[%c0, %c0_0] : memref<128x256xbf16, #tpu.memory_space<vmem>>, vector<128x256xbf16>
    %c0_1 = arith.constant 0 : index
    %c0_2 = arith.constant 0 : index
    %1 = vector.load %arg3[%c0_1, %c0_2] : memref<256x64xbf16, #tpu.memory_space<vmem>>, vector<256x64xbf16>
    %cst = arith.constant dense<0.000000e+00> : vector<128x64xf32>
    %2 = tpu.matmul %0, %1, %cst {dimension_numbers = #tpu.dot_dimension_numbers<[1], [0], [0], [1], [0, 0, 1, 1], [], []>} : vector<128x256xbf16>, vector<256x64xbf16>, vector<128x64xf32> -> vector<128x64xf32>
    %c0_3 = arith.constant 0 : index
    %c0_4 = arith.constant 0 : index
    %3 = vector.load %arg4[%c0_3, %c0_4] : memref<1x64xf32, #tpu.memory_space<vmem>>, vector<1x64xf32>
    %4 = vector.broadcast %3 : vector<1x64xf32> to vector<128x64xf32>
    %5 = arith.mulf %2, %4 : vector<128x64xf32>
    %c0_5 = arith.constant 0 : index
    %c0_6 = arith.constant 0 : index
    %6 = vector.load %arg5[%c0_5, %c0_6] : memref<1x64xf32, #tpu.memory_space<vmem>>, vector<1x64xf32>
    %7 = vector.broadcast %6 : vector<1x64xf32> to vector<128x64xf32>
    %8 = arith.addf %5, %7 : vector<128x64xf32>
    %cst_7 = arith.constant 5.000000e-01 : f32
    %9 = vector.broadcast %cst_7 : f32 to vector<128x64xf32>
    %10 = arith.mulf %9, %8 : vector<128x64xf32>
    %cst_8 = arith.constant 0.707106769 : f32
    %11 = vector.broadcast %cst_8 : f32 to vector<128x64xf32>
    %12 = arith.mulf %8, %11 : vector<128x64xf32>
    %cst_9 = arith.constant 0.000000e+00 : f32
    %13 = vector.broadcast %cst_9 : f32 to vector<128x64xf32>
    %14 = arith.cmpf oge, %12, %13 : vector<128x64xf32>
    %cst_10 = arith.constant 1.000000e+00 : f32
    %cst_11 = arith.constant -1.000000e+00 : f32
    %15 = vector.broadcast %cst_10 : f32 to vector<128x64xf32>
    %16 = vector.broadcast %cst_11 : f32 to vector<128x64xf32>
    %17 = arith.select %14, %15, %16 : vector<128x64xi1>, vector<128x64xf32>
    %18 = math.absf %12 : vector<128x64xf32>
    %cst_12 = arith.constant 0.327591091 : f32
    %19 = vector.broadcast %cst_12 : f32 to vector<128x64xf32>
    %20 = arith.mulf %19, %18 : vector<128x64xf32>
    %cst_13 = arith.constant 1.000000e+00 : f32
    %21 = vector.broadcast %cst_13 : f32 to vector<128x64xf32>
    %22 = arith.addf %21, %20 : vector<128x64xf32>
    %cst_14 = arith.constant 1.000000e+00 : f32
    %23 = vector.broadcast %cst_14 : f32 to vector<128x64xf32>
    %24 = arith.divf %23, %22 : vector<128x64xf32>
    %cst_15 = arith.constant 1.06140542 : f32
    %25 = vector.broadcast %cst_15 : f32 to vector<128x64xf32>
    %26 = arith.mulf %25, %24 : vector<128x64xf32>
    %cst_16 = arith.constant -1.45315206 : f32
    %27 = vector.broadcast %cst_16 : f32 to vector<128x64xf32>
    %28 = arith.addf %26, %27 : vector<128x64xf32>
    %29 = arith.mulf %28, %24 : vector<128x64xf32>
    %cst_17 = arith.constant 1.42141378 : f32
    %30 = vector.broadcast %cst_17 : f32 to vector<128x64xf32>
    %31 = arith.addf %29, %30 : vector<128x64xf32>
    %32 = arith.mulf %31, %24 : vector<128x64xf32>
    %cst_18 = arith.constant -0.284496725 : f32
    %33 = vector.broadcast %cst_18 : f32 to vector<128x64xf32>
    %34 = arith.addf %32, %33 : vector<128x64xf32>
    %35 = arith.mulf %34, %24 : vector<128x64xf32>
    %cst_19 = arith.constant 0.254829586 : f32
    %36 = vector.broadcast %cst_19 : f32 to vector<128x64xf32>
    %37 = arith.addf %35, %36 : vector<128x64xf32>
    %38 = arith.mulf %37, %24 : vector<128x64xf32>
    %cst_20 = arith.constant 0.000000e+00 : f32
    %39 = vector.broadcast %cst_20 : f32 to vector<128x64xf32>
    %40 = arith.subf %39, %18 : vector<128x64xf32>
    %41 = arith.mulf %40, %18 : vector<128x64xf32>
    %42 = math.exp %41 : vector<128x64xf32>
    %43 = arith.mulf %38, %42 : vector<128x64xf32>
    %cst_21 = arith.constant 1.000000e+00 : f32
    %44 = vector.broadcast %cst_21 : f32 to vector<128x64xf32>
    %45 = arith.subf %44, %43 : vector<128x64xf32>
    %46 = arith.mulf %17, %45 : vector<128x64xf32>
    %cst_22 = arith.constant 1.000000e+00 : f32
    %47 = vector.broadcast %cst_22 : f32 to vector<128x64xf32>
    %48 = arith.addf %47, %46 : vector<128x64xf32>
    %49 = arith.mulf %10, %48 : vector<128x64xf32>
    %50 = arith.truncf %49 : vector<128x64xf32> to vector<128x64xbf16>
    %c0_23 = arith.constant 0 : index
    %c0_24 = arith.constant 0 : index
    %51 = vector.load %arg6[%c0_23, %c0_24] : memref<128x64xbf16, #tpu.memory_space<vmem>>, vector<128x64xbf16>
    tpu.vector_store %arg6[%c0_23, %c0_24], %50 {strides = array<i32>} : memref<128x64xbf16, #tpu.memory_space<vmem>>, vector<128x64xbf16>,
    return
  }
  func.func @transform_0(%arg0: i32, %arg1: i32) -> (i32, i32) {
    %c0_i32 = arith.constant 0 : i32
    %c0_i32_0 = arith.constant 0 : i32
    return %arg0, %c0_i32 : i32, i32
  }
  func.func @transform_1(%arg0: i32, %arg1: i32) -> (i32, i32) {
    %c0_i32 = arith.constant 0 : i32
    %c0_i32_0 = arith.constant 0 : i32
    return %c0_i32, %arg1 : i32, i32
  }
  func.func @transform_2(%arg0: i32, %arg1: i32) -> (i32, i32) {
    %c0_i32 = arith.constant 0 : i32
    %c0_i32_0 = arith.constant 0 : i32
    return %c0_i32, %arg1 : i32, i32
  }
  func.func @transform_3(%arg0: i32, %arg1: i32) -> (i32, i32) {
    %c0_i32 = arith.constant 0 : i32
    %c0_i32_0 = arith.constant 0 : i32
    return %c0_i32, %arg1 : i32, i32
  }
  func.func @transform_4(%arg0: i32, %arg1: i32) -> (i32, i32) {
    %c0_i32 = arith.constant 0 : i32
    return %arg0, %arg1 : i32, i32
  }
}

</mosaic_0001>

<bundles_post_ra>
// kernel: tpu_custom_call.1
= control target key start
LH: loop header
LB: loop body
LE: loop exit
PB: predicated region body
PF: predicated region fallthrough
CT: control target
= control target key end

     0   :  { %s2054_s1 = inlined_call_operand.vmem [shape: bf16[256,64], index: 1, kind: input, shape index: {}]   ;;  %s2055_s0 = inlined_call_operand.vmem [shape: bf16[128,256], index: 0, kind: input, shape index: {}]   ;;  %s2056_s2 = inlined_call_operand.vmem [shape: f32[1,64], index: 2, kind: input, shape index: {}]   ;;  %s2057_s3 = inlined_call_operand.vmem [shape: f32[1,64], index: 3, kind: input, shape index: {}]   ;;  %s2058_s4 = inlined_call_operand.vmem [shape: bf16[128,64], index: 4, kind: output, shape index: {}]  }
   0x1   :  { %v1207_v0 = vld [vmem:[%s2054_s1 + $0x38] sm:$0xff]  ;;  %v1206_v2 = vld [vmem:[%s2054_s1 + $0x30] sm:$0xff]  ;;  %v1205_v4 = vld [vmem:[%s2054_s1 + $0x28] sm:$0xff] }
   0x2   :  { %v1215_v1 = vld [vmem:[%s2054_s1 + $0x78] sm:$0xff]  ;;  %241 = vmatpush.bf16.msra.mxu0 %v1207_v0  ;;  %1216 = vmatpush.bf16.msra.mxu2 %v1207_v0  ;;  %v1214_v3 = vld [vmem:[%s2054_s1 + $0x70] sm:$0xff]  ;;  %v1213_v5 = vld [vmem:[%s2054_s1 + $0x68] sm:$0xff] }
   0x3   :  { %290 = vmatpush.bf16.msra.mxu1 %v1215_v1  ;;  %1224 = vmatpush.bf16.msra.mxu3 %v1215_v1  ;;  %v1204_v6 = vld [vmem:[%s2054_s1 + $0x20] sm:$0xff]  ;;  %v1203_v8 = vld [vmem:[%s2054_s1 + $0x18] sm:$0xff]  ;;  %v1202_v10 = vld [vmem:[%s2054_s1 + $0x10] sm:$0xff] }
   0x4   :  { %v1212_v7 = vld [vmem:[%s2054_s1 + $0x60] sm:$0xff]  ;;  %v1211_v9 = vld [vmem:[%s2054_s1 + $0x58] sm:$0xff]  ;;  %v1210_v11 = vld [vmem:[%s2054_s1 + $0x50] sm:$0xff] }
   0x5   :  { %v1201_v12 = vld [vmem:[%s2054_s1 + $0x8] sm:$0xff]  ;;  %v1200_v14 = vld [vmem:[%s2054_s1] sm:$0xff]  ;;  %v1066_v28 = vld [vmem:[%s2055_s0 + $0x10] sm:$0xf] }
   0x6   :  { %242 = vmatpush.bf16.msra.mxu0 %v1206_v2  ;;  %1217 = vmatpush.bf16.msra.mxu2 %v1206_v2  ;;  %v1209_v13 = vld [vmem:[%s2054_s1 + $0x48] sm:$0xff]  ;;  %v1208_v15 = vld [vmem:[%s2054_s1 + $0x40] sm:$0xff]  ;;  %v1187_v29 = vld [vmem:[%s2055_s0 + $0x14] sm:$0xf0] }
   0x7   :  { %291 = vmatpush.bf16.msra.mxu1 %v1214_v3  ;;  %1225 = vmatpush.bf16.msra.mxu3 %v1214_v3  ;;  %v1058_v16 = vld [vmem:[%s2055_s0] sm:$0xf]  ;;  %v1185_v17 = vld [vmem:[%s2055_s0 + $0x4] sm:$0xf0]  ;;  %v1184_v20 = vld [vmem:[%s2055_s0 + $0x4] sm:$0xf]  ;;  %v1067_v36 = vor.u32 %v1187_v29, %v1066_v28 }
   0x8   :  { %v1090_v18 = vld [vmem:[%s2055_s0 + $0x40] sm:$0xf]  ;;  %v1193_v19 = vld [vmem:[%s2055_s0 + $0x44] sm:$0xf0]  ;;  %v1060_v21 = vld [vmem:[%s2055_s0 + $0x8] sm:$0xf0]  ;;  %v1059_v24 = vor.u32 %v1185_v17, %v1058_v16 }
   0x9   :  { %v1192_v22 = vld [vmem:[%s2055_s0 + $0x44] sm:$0xf]  ;;  %v1092_v23 = vld [vmem:[%s2055_s0 + $0x48] sm:$0xf0]  ;;  %v1091_v25 = vor.u32 %v1193_v19, %v1090_v18  ;;  %v1063_v26 = vor.u32 %v1184_v20, %v1060_v21  ;;  %v1098_v30 = vld [vmem:[%s2055_s0 + $0x50] sm:$0xf] }
   0xa   :  { %243 = vmatpush.bf16.msra.mxu0 %v1205_v4  ;;  %1218 = vmatpush.bf16.msra.mxu2 %v1205_v4  ;;  %v1095_v27 = vor.u32 %v1192_v22, %v1092_v23  ;;  %v1195_v31 = vld [vmem:[%s2055_s0 + $0x54] sm:$0xf0]  ;;  %v1186_v32 = vld [vmem:[%s2055_s0 + $0x14] sm:$0xf]  ;;  %v1068_v33 = vld [vmem:[%s2055_s0 + $0x18] sm:$0xf0] }
   0xb   :  { %292 = vmatpush.bf16.msra.mxu1 %v1213_v5  ;;  %1226 = vmatpush.bf16.msra.mxu3 %v1213_v5  ;;  %v1194_v34 = vld [vmem:[%s2055_s0 + $0x54] sm:$0xf]  ;;  %v1100_v35 = vld [vmem:[%s2055_s0 + $0x58] sm:$0xf0]  ;;  %v1099_v37 = vor.u32 %v1195_v31, %v1098_v30  ;;  %v1071_v38 = vor.u32 %v1186_v32, %v1068_v33  ;;  %v1074_v40 = vld [vmem:[%s2055_s0 + $0x20] sm:$0xf] }
   0xc   :  { %v1103_v39 = vor.u32 %v1194_v34, %v1100_v35  ;;  %v1189_v41 = vld [vmem:[%s2055_s0 + $0x24] sm:$0xf0]  ;;  %v1106_v42 = vld [vmem:[%s2055_s0 + $0x60] sm:$0xf]  ;;  %v1188_v44 = vld [vmem:[%s2055_s0 + $0x24] sm:$0xf] }
   0xd   :  { %v1197_v43 = vld [vmem:[%s2055_s0 + $0x64] sm:$0xf0]  ;;  %v1076_v45 = vld [vmem:[%s2055_s0 + $0x28] sm:$0xf0]  ;;  %v1196_v46 = vld [vmem:[%s2055_s0 + $0x64] sm:$0xf]  ;;  %v1075_v48 = vor.u32 %v1189_v41, %v1074_v40 }
   0xe   :  { %244 = vmatpush.bf16.msra.mxu0 %v1204_v6  ;;  %1219 = vmatpush.bf16.msra.mxu2 %v1204_v6  ;;  %v1108_v47 = vld [vmem:[%s2055_s0 + $0x68] sm:$0xf0]  ;;  %v1107_v49 = vor.u32 %v1197_v43, %v1106_v42  ;;  %v1079_v50 = vor.u32 %v1188_v44, %v1076_v45  ;;  %v1082_v52 = vld [vmem:[%s2055_s0 + $0x30] sm:$0xf]  ;;  %v1191_v53 = vld [vmem:[%s2055_s0 + $0x34] sm:$0xf0] }
   0xf   :  { %293 = vmatpush.bf16.msra.mxu1 %v1212_v7  ;;  %1227 = vmatpush.bf16.msra.mxu3 %v1212_v7  ;;  %v1111_v51 = vor.u32 %v1196_v46, %v1108_v47  ;;  %v1114_v54 = vld [vmem:[%s2055_s0 + $0x70] sm:$0xf]  ;;  %v1199_v55 = vld [vmem:[%s2055_s0 + $0x74] sm:$0xf0]  ;;  %v1190_v56 = vld [vmem:[%s2055_s0 + $0x34] sm:$0xf]  ;;  %v1083_v60 = vor.u32 %v1191_v53, %v1082_v52 }
  0x10   :  { %v1084_v57 = vld [vmem:[%s2055_s0 + $0x38] sm:$0xf0]  ;;  %v1198_v58 = vld [vmem:[%s2055_s0 + $0x74] sm:$0xf]  ;;  %v1115_v61 = vor.u32 %v1199_v55, %v1114_v54  ;;  %v1474_v1 = vld [vmem:[%s2056_s2] ss:$0 sm:$0xff] }
  0x11   :  { %v1116_v59 = vld [vmem:[%s2055_s0 + $0x78] sm:$0xf0]  ;;  %v1087_v62 = vor.u32 %v1190_v56, %v1084_v57  ;;  %v1479_v4 = vld [vmem:[%s2057_s3] ss:$0 sm:$0xff] }
  0x12   :  { %245 = vmatpush.bf16.msra.mxu0 %v1203_v8  ;;  %1220 = vmatpush.bf16.msra.mxu2 %v1203_v8  ;;  %v1119_v63 = vor.u32 %v1198_v58, %v1116_v59 }
  0x13   :  { %294 = vmatpush.bf16.msra.mxu1 %v1211_v9  ;;  %1228 = vmatpush.bf16.msra.mxu3 %v1211_v9 }
  0x16   :  { %246 = vmatpush.bf16.msra.mxu0 %v1202_v10  ;;  %1221 = vmatpush.bf16.msra.mxu2 %v1202_v10 }
  0x17   :  { %295 = vmatpush.bf16.msra.mxu1 %v1210_v11  ;;  %1229 = vmatpush.bf16.msra.mxu3 %v1210_v11 }
  0x1a   :  { %247 = vmatpush.bf16.msra.mxu0 %v1201_v12  ;;  %1222 = vmatpush.bf16.msra.mxu2 %v1201_v12 }
  0x1b   :  { %296 = vmatpush.bf16.msra.mxu1 %v1209_v13  ;;  %1230 = vmatpush.bf16.msra.mxu3 %v1209_v13 }
  0x1e   :  { %248 = vmatpush.bf16.msra.mxu0 %v1200_v14  ;;  %1223 = vmatpush.bf16.msra.mxu2 %v1200_v14 }
  0x1f   :  { %297 = vmatpush.bf16.msra.mxu1 %v1208_v15  ;;  %1231 = vmatpush.bf16.msra.mxu3 %v1208_v15 }
  0x21   :  { %249 = vmatmul.bf16.vlgmr.msra.gmra.mxu0 %v1059_v24  ;;  %269 = vmatmul.bf16.vlgmr.msra.gmra.mxu2 %v1091_v25 }
  0x22   :  { %298 = vmatmul.bf16.vlgmr.msra.gmra.mxu1 %v1063_v26  ;;  %318 = vmatmul.bf16.vlgmr.msra.gmra.mxu3 %v1095_v27 }
  0x31   :  { %254 = vmatmul.bf16.gmra.mxu0 %v1067_v36  ;;  %274 = vmatmul.bf16.gmra.mxu2 %v1099_v37 }
  0x32   :  { %303 = vmatmul.bf16.gmra.mxu1 %v1071_v38  ;;  %323 = vmatmul.bf16.gmra.mxu3 %v1103_v39 }
  0x41   :  { %259 = vmatmul.bf16.gmra.mxu0 %v1075_v48  ;;  %279 = vmatmul.bf16.gmra.mxu2 %v1107_v49 }
  0x42   :  { %308 = vmatmul.bf16.gmra.mxu1 %v1079_v50  ;;  %328 = vmatmul.bf16.gmra.mxu3 %v1111_v51  ;;  %v1301_v50 = vmov -1.0  }
  0x51   :  { %264 = vmatmul.bf16.gmra.mxu0 %v1083_v60  ;;  %284 = vmatmul.bf16.gmra.mxu2 %v1115_v61 }
  0x52   :  { %313 = vmatmul.bf16.gmra.mxu1 %v1087_v62  ;;  %333 = vmatmul.bf16.gmra.mxu3 %v1119_v63 }
  0x9e   :  { %v250_v0 = vpop.f32.mrf.mxu0 }
  0x9f   :  { %v299_v2 = vpop.f32.mrf.mxu1 }
  0xa0   :  { %v300_v3 = vadd.f32 %v299_v2, %v250_v0 }
  0xa2   :  { %v343_v5 = vmul.f32 %v1474_v1, %v300_v3 }
  0xa4   :  { %v363_v6 = vadd.f32 %v1479_v4, %v343_v5  ;;  %v270_v7 = vpop.f32.mrf.mxu2 }
  0xa5   :  { %v319_v8 = vpop.f32.mrf.mxu3 }
  0xa6   :  { %v395_v9 = vmul.f32 0.70710677, %v363_v6  ;;  %v320_v10 = vadd.f32 %v319_v8, %v270_v7  ;;  %v252_v11 = vpop.f32.mrf.mxu0  ;;  %v1492_v40 = vmul.f32 0.5, %v363_v6 }
  0xa7   :  { %v301_v12 = vpop.f32.mrf.mxu1 }
  0xa8   :  { %v443_v13 = vand.u32 2147483647, %v395_v9  ;;  %v351_v14 = vmul.f32 %v1474_v1, %v320_v10  ;;  %v302_v15 = vadd.f32 %v301_v12, %v252_v11  ;;  %vm411_vm0 = vcmp.ge.f32.partialorder %v395_v9, 0.0 }
  0xa9   :  { %v1504_v51 = vsel %vm411_vm0, 1.0, %v1301_v50 }
  0xaa   :  { %v459_v16 = vmul.f32 0.3275911, %v443_v13  ;;  %v371_v17 = vadd.f32 %v1479_v4, %v351_v14  ;;  %v344_v18 = vmul.f32 %v1474_v1, %v302_v15  ;;  %v875_v27 = vsub.f32 0.0, %v443_v13 }
  0xac   :  { %v475_v19 = vadd.f32 1.0, %v459_v16  ;;  %v403_v20 = vmul.f32 0.70710677, %v371_v17  ;;  %v364_v21 = vadd.f32 %v1479_v4, %v344_v18  ;;  %v272_v22 = vpop.f32.mrf.mxu2  ;;  %v891_v36 = vmul.f32 %v875_v27, %v443_v13 }
  0xad   :  { %v321_v23 = vpop.f32.mrf.mxu3  ;;  %v1506_v52 = vmul.f32 0.5, %v371_v17 }
  0xae   :  { %1235 = vrcp.f32 %v475_v19  ;;  %v451_v24 = vand.u32 2147483647, %v403_v20  ;;  %v255_v25 = vpop.f32.mrf.mxu0  ;;  %v396_v28 = vmul.f32 0.70710677, %v364_v21  ;;  %v322_v30 = vadd.f32 %v321_v23, %v272_v22 }
  0xaf   :  { %v304_v26 = vpop.f32.mrf.mxu1  ;;  %v500_v43 = vand.u32 2147483647, %v475_v19  ;;  %v502_v44 = vand.u32 2147483648, %v475_v19  ;;  %vm496_vm1 = vweird.f32 %v475_v19  ;;  %v907_v46 = vmul.f32 1.442695, %v891_v36 }
  0xb0   :  { %v467_v29 = vmul.f32 0.3275911, %v451_v24  ;;  %v444_v31 = vand.u32 2147483647, %v396_v28  ;;  %v305_v32 = vadd.f32 %v304_v26, %v255_v25  ;;  %v352_v34 = vmul.f32 %v1474_v1, %v322_v30 }
  0xb1   :  { %vm419_vm2 = vcmp.ge.f32.partialorder %v403_v20, 0.0  ;;  %v883_v47 = vsub.f32 0.0, %v451_v24  ;;  %v1508_v53 = vmul.f32 0.5, %v364_v21  ;;  %vm501_vm4 = vcmp.eq.f32.partialorder %v500_v43, 8.507059e+37 }
  0xb2   :  { %v1487_v33 = vadd.f32 1.0, %v467_v29  ;;  %v460_v37 = vmul.f32 0.3275911, %v444_v31  ;;  %v345_v39 = vmul.f32 %v1474_v1, %v305_v32  ;;  %v1497_v45 = vadd.f32 %v1479_v4, %v352_v34 }
  0xb3   :  { %v503_v57 = vor.u32 1.1754944e-38, %v502_v44  ;;  %vm412_vm5 = vcmp.ge.f32.partialorder %v396_v28, 0.0  ;;  %v1516_v58 = vsel %vm419_vm2, 1.0, %v1301_v50  ;;  %v899_v60 = vmul.f32 %v883_v47, %v451_v24 }
  0xb4   :  { %v1236_v35 = vpop.eup %1235  ;;  %1237 = vrcp.f32 %v1487_v33  ;;  %v1494_v41 = vadd.f32 1.0, %v460_v37  ;;  %v1501_v49 = vadd.f32 %v1479_v4, %v345_v39  ;;  %v1511_v54 = vmul.f32 0.70710677, %v1497_v45  ;;  %v275_v11 = vpop.f32.mrf.mxu2 }
  0xb5   :  { %v492_v38 = vmul.f32 %v1236_v35, %v475_v19  ;;  %vm497_vm3 = vweird.f32 %v1236_v35  ;;  %v876_v62 = vsub.f32 0.0, %v444_v31  ;;  %v620_v5 = vand.u32 2147483647, %v1487_v33  ;;  %v324_v12 = vpop.f32.mrf.mxu3 }
  0xb6   :  { %1239 = vrcp.f32 %v1494_v41  ;;  %vm498_vm6 = vmor %vm496_vm1, %vm497_vm3  ;;  %v1520_v63 = vand.u32 2147483647, %v1511_v54  ;;  %v1523_v0 = vmul.f32 0.70710677, %v1501_v49  ;;  %v1529_v6 = vsel %vm412_vm5, 1.0, %v1301_v50  ;;  %v257_v36 = vpop.f32.mrf.mxu0 }
  0xb7   :  { %v493_v42 = vsub.f32 1.0, %v492_v38  ;;  %1241 = vpow2.f32 %v907_v46  ;;  %vm616_vm7 = vweird.f32 %v1487_v33  ;;  %v622_v9 = vand.u32 2147483648, %v1487_v33  ;;  %v306_v37 = vpop.f32.mrf.mxu1 }
  0xb8   :  { %v468_v10 = vmul.f32 0.3275911, %v1520_v63  ;;  %v923_v14 = vmul.f32 1.442695, %v899_v60  ;;  %v892_v17 = vmul.f32 %v876_v62, %v444_v31  ;;  %v1539_v19 = vand.u32 2147483647, %v1523_v0 }
  0xb9   :  { %v494_v48 = vmul.f32 %v1236_v35, %v493_v42  ;;  %vm621_vm9 = vcmp.eq.f32.partialorder %v620_v5, 8.507059e+37  ;;  %v325_v23 = vadd.f32 %v324_v12, %v275_v11  ;;  %v623_v25 = vor.u32 1.1754944e-38, %v622_v9 }
  0xba   :  { %v1238_v55 = vpop.eup %1237  ;;  %v1536_v18 = vadd.f32 1.0, %v468_v10  ;;  %v517_v26 = vand.u32 2147483648, %v1494_v41  ;;  %v515_v29 = vand.u32 2147483647, %v1494_v41  ;;  %v461_v32 = vmul.f32 0.3275911, %v1539_v19 }
  0xbb   :  { %v495_v56 = vadd.f32 %v1236_v35, %v494_v48  ;;  %v612_v59 = vmul.f32 %v1238_v55, %v1487_v33  ;;  %vm617_vm8 = vweird.f32 %v1238_v55  ;;  %vm511_vm12 = vweird.f32 %v1494_v41 }
  0xbc   :  { %v1240_v7 = vpop.eup %1239  ;;  %vm618_vm10 = vmor %vm616_vm7, %vm617_vm8  ;;  %1243 = vrcp.f32 %v1536_v18  ;;  %v518_v39 = vor.u32 1.1754944e-38, %v517_v26  ;;  %v909_v42 = vmul.f32 1.442695, %v892_v17  ;;  %v1556_v43 = vadd.f32 1.0, %v461_v32 }
  0xbd   :  { %v499_v61 = vsel %vm498_vm6, %v1236_v35, %v495_v56  ;;  %v613_v3 = vsub.f32 1.0, %v612_v59  ;;  %v507_v15 = vmul.f32 %v1240_v7, %v1494_v41  ;;  %v1541_v20 = vpop.eup %1241  ;;  %vm512_vm11 = vweird.f32 %v1240_v7 }
  0xbe   :  { %v1525_v2 = vsel %vm501_vm4, %v503_v57, %v499_v61  ;;  %1245 = vpow2.f32 %v923_v14  ;;  %v353_v35 = vmul.f32 %v1474_v1, %v325_v23  ;;  %vm513_vm13 = vmor %vm511_vm12, %vm512_vm11  ;;  %vm516_vm14 = vcmp.eq.f32.partialorder %v515_v29, 8.507059e+37 }
  0xbf   :  { %v731_v8 = vmul.f32 1.0614054, %v1525_v2  ;;  %v614_v13 = vmul.f32 %v1238_v55, %v613_v3  ;;  %v508_v22 = vsub.f32 1.0, %v507_v15  ;;  %v884_v47 = vsub.f32 0.0, %v1520_v63 }
  0xc0   :  { %1247 = vrcp.f32 %v1556_v43  ;;  %v307_v41 = vadd.f32 %v306_v37, %v257_v36  ;;  %v1566_v61 = vadd.f32 %v1479_v4, %v353_v35  ;;  %v635_v5 = vand.u32 2147483647, %v1536_v18 }
  0xc1   :  { %v747_v16 = vadd.f32 -1.4531521, %v731_v8  ;;  %v615_v21 = vadd.f32 %v1238_v55, %v614_v13  ;;  %v509_v28 = vmul.f32 %v1240_v7, %v508_v22  ;;  %1249 = vpow2.f32 %v909_v42 }
  0xc2   :  { %v1244_v48 = vpop.eup %1243  ;;  %v900_v11 = vmul.f32 %v884_v47, %v1520_v63  ;;  %vm631_vm15 = vweird.f32 %v1536_v18  ;;  %v346_v13 = vmul.f32 %v1474_v1, %v307_v41  ;;  %v1577_v17 = vmul.f32 0.70710677, %v1566_v61 }
  0xc3   :  { %v763_v24 = vmul.f32 %v747_v16, %v1525_v2  ;;  %v619_v27 = vsel %vm618_vm10, %v1238_v55, %v615_v21  ;;  %v510_v33 = vadd.f32 %v1240_v7, %v509_v28  ;;  %v627_v60 = vmul.f32 %v1244_v48, %v1536_v18 }
  0xc4   :  { %v1549_v31 = vsel %vm621_vm9, %v623_v25, %v619_v27  ;;  %v1246_v62 = vpop.eup %1245  ;;  %vm632_vm0 = vweird.f32 %v1244_v48  ;;  %vm1580_vm1 = vcmp.eq.f32.partialorder %v635_v5, 8.507059e+37  ;;  %vm526_vm2 = vweird.f32 %v1556_v43 }
  0xc5   :  { %v779_v30 = vadd.f32 1.4214138, %v763_v24  ;;  %v739_v34 = vmul.f32 1.0614054, %v1549_v31  ;;  %v514_v46 = vsel %vm513_vm13, %v1240_v7, %v510_v33  ;;  %v637_v7 = vand.u32 2147483648, %v1536_v18  ;;  %vm633_vm3 = vmor %vm631_vm15, %vm632_vm0 }
  0xc6   :  { %v1559_v56 = vsel %vm516_vm14, %v518_v39, %v514_v46  ;;  %v628_v10 = vsub.f32 1.0, %v627_v60  ;;  %v1248_v21 = vpop.eup %1247  ;;  %v1593_v32 = vand.u32 2147483647, %v1577_v17  ;;  %vm1035_vm4 = vcmask 519168  }
  0xc7   :  { %v795_v38 = vmul.f32 %v779_v30, %v1525_v2  ;;  %v755_v44 = vadd.f32 -1.4531521, %v739_v34  ;;  %v732_v59 = vmul.f32 1.0614054, %v1559_v56  ;;  %v638_v63 = vor.u32 1.1754944e-38, %v637_v7  ;;  %v1250_v28 = vpop.eup %1249 }
  0xc8   :  { %v629_v16 = vmul.f32 %v1244_v48, %v628_v10  ;;  %v522_v27 = vmul.f32 %v1248_v21, %v1556_v43  ;;  %v532_v30 = vand.u32 2147483648, %v1556_v43  ;;  %vm527_vm5 = vweird.f32 %v1248_v21  ;;  %v277_v10 = vpop.f32.mrf.mxu2 }
  0xc9   :  { %v811_v55 = vadd.f32 -0.28449672, %v795_v38  ;;  %v771_v57 = vmul.f32 %v755_v44, %v1549_v31  ;;  %v748_v9 = vadd.f32 -1.4531521, %v732_v59  ;;  %v469_v18 = vmul.f32 0.3275911, %v1593_v32  ;;  %vm528_vm6 = vmor %vm526_vm2, %vm527_vm5 }
  0xca   :  { %v630_v26 = vadd.f32 %v1244_v48, %v629_v16  ;;  %v523_v36 = vsub.f32 1.0, %v522_v27  ;;  %v877_v47 = vsub.f32 0.0, %v1539_v19  ;;  %vm420_vm8 = vcmp.ge.f32.partialorder %v1511_v54, 0.0 }
  0xcb   :  { %v827_v3 = vmul.f32 %v811_v55, %v1525_v2  ;;  %v787_v8 = vadd.f32 1.4214138, %v771_v57  ;;  %v764_v15 = vmul.f32 %v748_v9, %v1559_v56  ;;  %v1605_v55 = vadd.f32 1.0, %v469_v18 }
  0xcc   :  { %v634_v35 = vsel %vm633_vm3, %v1244_v48, %v630_v26  ;;  %v524_v44 = vmul.f32 %v1248_v21, %v523_v36  ;;  %v1608_v48 = vadd.f32 %v1479_v4, %v346_v13  ;;  %v925_v13 = vmul.f32 1.442695, %v900_v11 }
  0xcd   :  { %v843_v12 = vadd.f32 0.2548296, %v827_v3  ;;  %v803_v14 = vmul.f32 %v787_v8, %v1549_v31  ;;  %v780_v25 = vadd.f32 1.4214138, %v764_v15  ;;  %1251 = vrcp.f32 %v1605_v55 }
  0xce   :  { %v525_v60 = vadd.f32 %v1248_v21, %v524_v44  ;;  %v1621_v15 = vmul.f32 0.70710677, %v1608_v48  ;;  %1253 = vpow2.f32 %v925_v13  ;;  %vm646_vm10 = vweird.f32 %v1605_v55 }
  0xcf   :  { %v859_v22 = vmul.f32 %v843_v12, %v1525_v2  ;;  %v819_v24 = vadd.f32 -0.28449672, %v803_v14  ;;  %v530_v2 = vand.u32 2147483647, %v1556_v43  ;;  %v796_v33 = vmul.f32 %v780_v25, %v1559_v56 }
  0xd0   :  { %v529_v9 = vsel %vm528_vm6, %v1248_v21, %v525_v60  ;;  %v893_v21 = vmul.f32 %v877_v47, %v1539_v19  ;;  %v1640_v19 = vand.u32 2147483647, %v1621_v15  ;;  %v885_v54 = vsub.f32 0.0, %v1593_v32 }
  0xd1   :  { %v939_v29 = vmul.f32 %v1541_v20, %v859_v22  ;;  %v835_v34 = vmul.f32 %v819_v24, %v1549_v31  ;;  %v1599_v20 = vsel %vm1580_vm1, %v638_v63, %v634_v35  ;;  %v812_v39 = vadd.f32 -0.28449672, %v796_v33 }
  0xd2   :  { %v740_v42 = vmul.f32 1.0614054, %v1599_v20  ;;  %vm531_vm7 = vcmp.eq.f32.partialorder %v530_v2, 8.507059e+37  ;;  %v1626_v63 = vmul.f32 0.5, %v1497_v45  ;;  %v1637_v45 = vmul.f32 0.5, %v1501_v49 }
  0xd3   :  { %v955_v37 = vsub.f32 1.0, %v939_v29  ;;  %v851_v38 = vadd.f32 0.2548296, %v835_v34  ;;  %v828_v57 = vmul.f32 %v812_v39, %v1559_v56  ;;  %v1252_v27 = vpop.eup %1251  ;;  %v911_v2 = vmul.f32 1.442695, %v893_v21 }
  0xd4   :  { %v756_v59 = vadd.f32 -1.4531521, %v740_v42  ;;  %v462_v34 = vmul.f32 0.3275911, %v1640_v19  ;;  %v652_v39 = vand.u32 2147483648, %v1605_v55  ;;  %vm647_vm9 = vweird.f32 %v1252_v27 }
  0xd5   :  { %v971_v46 = vmul.f32 %v955_v37, %v1504_v51  ;;  %v867_v41 = vmul.f32 %v851_v38, %v1549_v31  ;;  %v533_v51 = vor.u32 1.1754944e-38, %v532_v30  ;;  %v844_v7 = vadd.f32 0.2548296, %v828_v57  ;;  %v326_v31 = vpop.f32.mrf.mxu3  ;;  %v260_v57 = vpop.f32.mrf.mxu0  ;;  %vm648_vm11 = vmor %vm646_vm10, %vm647_vm9 }
  0xd6   :  { %v772_v8 = vmul.f32 %v756_v59, %v1599_v20  ;;  %v327_v24 = vadd.f32 %v326_v31, %v277_v10  ;;  %v642_v30 = vmul.f32 %v1252_v27, %v1605_v55  ;;  %v650_v38 = vand.u32 2147483647, %v1605_v55  ;;  %v309_v59 = vpop.f32.mrf.mxu1 }
  0xd7   :  { %v987_v3 = vadd.f32 1.0, %v971_v46  ;;  %v947_v5 = vmul.f32 %v1246_v62, %v867_v41  ;;  %v1618_v14 = vsel %vm531_vm7, %v533_v51, %v529_v9  ;;  %v860_v16 = vmul.f32 %v844_v7, %v1559_v56 }
  0xd8   :  { %v788_v22 = vadd.f32 1.4214138, %v772_v8  ;;  %v733_v62 = vmul.f32 1.0614054, %v1618_v14  ;;  %v354_v33 = vmul.f32 %v1474_v1, %v327_v24  ;;  %v643_v18 = vsub.f32 1.0, %v642_v30 }
  0xd9   :  { %v1003_v12 = vmul.f32 %v987_v3, %v1492_v40  ;;  %v963_v43 = vsub.f32 1.0, %v947_v5  ;;  %v940_v11 = vmul.f32 %v1250_v28, %v860_v16  ;;  %v1651_v42 = vadd.f32 1.0, %v462_v34 }
  0xda   :  { %v804_v25 = vmul.f32 %v788_v22, %v1599_v20  ;;  %v749_v26 = vadd.f32 -1.4531521, %v733_v62  ;;  %v644_v60 = vmul.f32 %v1252_v27, %v643_v18  ;;  %v436_v51 = vsel %vm420_vm8, 1.0, %v1301_v50 }
  0xdb   :  { %v1019_v23 = vpack.c.bf16 %v1003_v12, %v1003_v12  ;;  %v979_v40 = vmul.f32 %v963_v43, %v1516_v58  ;;  %v956_v56 = vsub.f32 1.0, %v940_v11  ;;  %1255 = vrcp.f32 %v1651_v42 }
  0xdc   :  { %v820_v28 = vadd.f32 -0.28449672, %v804_v25  ;;  %v765_v29 = vmul.f32 %v749_v26, %v1618_v14  ;;  %1257 = vpow2.f32 %v911_v2  ;;  %v645_v8 = vadd.f32 %v1252_v27, %v644_v60 }
  0xdd   :  { %1036 = vst.msk [vmem:[%s2058_s4] sm:$0xf] %vm1035_vm4, %v1019_v23  ;;  %v995_v58 = vadd.f32 1.0, %v979_v40  ;;  %v972_v49 = vmul.f32 %v956_v56, %v1529_v6  ;;  %v1656_v6 = vadd.f32 %v1479_v4, %v354_v33  ;;  %v310_v9 = vadd.f32 %v309_v59, %v260_v57  ;;  %v329_v16 = vpop.f32.mrf.mxu3 }
  0xde   :  { %v836_v36 = vmul.f32 %v820_v28, %v1599_v20  ;;  %v781_v37 = vadd.f32 1.4214138, %v765_v29  ;;  %v653_v13 = vor.u32 1.1754944e-38, %v652_v39  ;;  %vm651_vm12 = vcmp.eq.f32.partialorder %v650_v38, 8.507059e+37 }
  0xdf   :  { %v1011_v35 = vmul.f32 %v995_v58, %v1506_v52  ;;  %v988_v46 = vadd.f32 1.0, %v972_v49  ;;  %v1254_v52 = vpop.eup %1253  ;;  %v1672_v43 = vmul.f32 0.70710677, %v1656_v6  ;;  %vm413_vm13 = vcmp.ge.f32.partialorder %v1523_v0, 0.0 }
  0xe0   :  { %v852_v47 = vadd.f32 0.2548296, %v836_v36  ;;  %v797_v41 = vmul.f32 %v781_v37, %v1618_v14  ;;  %v878_v24 = vsub.f32 0.0, %v1640_v19  ;;  %v347_v11 = vmul.f32 %v1474_v1, %v310_v9 }
  0xe1   :  { %v1027_v44 = vpack.c.bf16 %v1011_v35, %v1011_v35  ;;  %v1004_v3 = vmul.f32 %v988_v46, %v1508_v53  ;;  %v649_v53 = vsel %vm648_vm11, %v1252_v27, %v645_v8  ;;  %v1256_v23 = vpop.eup %1255  ;;  %v1684_v40 = vand.u32 2147483647, %v1672_v43 }
  0xe2   :  { %v868_v5 = vmul.f32 %v852_v47, %v1599_v20  ;;  %v813_v7 = vadd.f32 -0.28449672, %v797_v41  ;;  %v280_v20 = vpop.f32.mrf.mxu2  ;;  %v1679_v62 = vsel %vm651_vm12, %v653_v13, %v649_v53  ;;  %v537_v27 = vmul.f32 %v1256_v23, %v1651_v42  ;;  %v1258_v56 = vpop.eup %1257 }
  0xe3   :  { %1044 = vst.msk [vmem:[%s2058_s4 + $0x20] sm:$0xf] %vm1035_vm4, %v1027_v44  ;;  %v1020_v10 = vpack.c.bf16 %v1004_v3, %v1004_v3  ;;  %v741_v21 = vmul.f32 1.0614054, %v1679_v62  ;;  %v330_v58 = vadd.f32 %v329_v16, %v280_v20  ;;  %v901_v29 = vmul.f32 %v885_v54, %v1593_v32  ;;  %v262_v16 = vpop.f32.mrf.mxu0 }
  0xe4   :  { %v948_v31 = vmul.f32 %v1254_v52, %v868_v5  ;;  %v829_v12 = vmul.f32 %v813_v7, %v1618_v14  ;;  %v545_v2 = vand.u32 2147483647, %v1651_v42  ;;  %v470_v30 = vmul.f32 0.3275911, %v1684_v40 }
  0xe5   :  { %1037 = vst.msk [vmem:[%s2058_s4 + $0x4] sm:$0xf] %vm1035_vm4, %v1020_v10  ;;  %v757_v28 = vadd.f32 -1.4531521, %v741_v21  ;;  %v538_v35 = vsub.f32 1.0, %v537_v27  ;;  %v547_v49 = vand.u32 2147483648, %v1651_v42  ;;  %vm542_vm14 = vweird.f32 %v1256_v23 }
  0xe6   :  { %v964_v55 = vsub.f32 1.0, %v948_v31  ;;  %v845_v22 = vadd.f32 0.2548296, %v829_v12  ;;  %v1697_v37 = vadd.f32 %v1479_v4, %v347_v11  ;;  %v355_v39 = vmul.f32 %v1474_v1, %v330_v58 }
  0xe7   :  { %v773_v36 = vmul.f32 %v757_v28, %v1679_v62  ;;  %v539_v38 = vmul.f32 %v1256_v23, %v538_v35  ;;  %v429_v44 = vsel %vm413_vm13, 1.0, %v1301_v50  ;;  %v927_v47 = vmul.f32 1.442695, %v901_v29 }
  0xe8   :  { %v980_v25 = vmul.f32 %v964_v55, %v436_v51  ;;  %v861_v26 = vmul.f32 %v845_v22, %v1618_v14  ;;  %v1694_v14 = vadd.f32 1.0, %v470_v30  ;;  %vm541_vm15 = vweird.f32 %v1651_v42  ;;  %v311_v55 = vpop.f32.mrf.mxu1 }
  0xe9   :  { %v789_v46 = vadd.f32 1.4214138, %v773_v36  ;;  %v540_v59 = vadd.f32 %v1256_v23, %v539_v38  ;;  %vm543_vm0 = vmor %vm541_vm15, %vm542_vm14  ;;  %vm546_vm1 = vcmp.eq.f32.partialorder %v545_v2, 8.507059e+37  ;;  %v1709_v60 = vmul.f32 0.70710677, %v1697_v37 }
  0xea   :  { %v996_v34 = vadd.f32 1.0, %v980_v25  ;;  %v941_v33 = vmul.f32 %v1258_v56, %v861_v26  ;;  %1259 = vrcp.f32 %v1694_v14  ;;  %v894_v51 = vmul.f32 %v878_v24, %v1640_v19 }
  0xeb   :  { %v805_v52 = vmul.f32 %v789_v46, %v1679_v62  ;;  %v544_v3 = vsel %vm543_vm0, %v1256_v23, %v540_v59  ;;  %v1717_v42 = vadd.f32 %v1479_v4, %v355_v39  ;;  %v1720_v5 = vmul.f32 0.5, %v1566_v61  ;;  %v331_v46 = vpop.f32.mrf.mxu3 }
  0xec   :  { %v1012_v18 = vmul.f32 %v996_v34, %v1626_v63  ;;  %v957_v32 = vsub.f32 1.0, %v941_v33  ;;  %v548_v63 = vor.u32 1.1754944e-38, %v547_v49  ;;  %1261 = vpow2.f32 %v927_v47 }
  0xed   :  { %v821_v7 = vadd.f32 -0.28449672, %v805_v52  ;;  %v1727_v31 = vand.u32 2147483647, %v1709_v60  ;;  %vm421_vm2 = vcmp.ge.f32.partialorder %v1577_v17, 0.0  ;;  %v1732_v13 = vmul.f32 0.5, %v1608_v48 }
  0xee   :  { %v1028_v41 = vpack.c.bf16 %v1012_v18, %v1012_v18  ;;  %v973_v57 = vmul.f32 %v957_v32, %v429_v44  ;;  %v1722_v8 = vsel %vm546_vm1, %v548_v63, %v544_v3  ;;  %v1735_v61 = vmul.f32 0.70710677, %v1717_v42  ;;  %v282_v44 = vpop.f32.mrf.mxu2 }
  0xef   :  { %v734_v10 = vmul.f32 1.0614054, %v1722_v8  ;;  %v837_v19 = vmul.f32 %v821_v7, %v1679_v62  ;;  %v665_v23 = vand.u32 2147483647, %v1694_v14  ;;  %v463_v21 = vmul.f32 0.3275911, %v1727_v31 }
  0xf0   :  { %1045 = vst.msk [vmem:[%s2058_s4 + $0x24] sm:$0xf] %vm1035_vm4, %v1028_v41  ;;  %v989_v0 = vadd.f32 1.0, %v973_v57  ;;  %v1260_v12 = vpop.eup %1259  ;;  %v886_v11 = vsub.f32 0.0, %v1684_v40  ;;  %v1747_v25 = vand.u32 2147483647, %v1735_v61  ;;  %v312_v56 = vadd.f32 %v311_v55, %v262_v16 }
  0xf1   :  { %v750_v54 = vadd.f32 -1.4531521, %v734_v10  ;;  %v657_v20 = vmul.f32 %v1260_v12, %v1694_v14  ;;  %v853_v22 = vadd.f32 0.2548296, %v837_v19  ;;  %v667_v27 = vand.u32 2147483648, %v1694_v14 }
  0xf2   :  { %v1005_v9 = vmul.f32 %v989_v0, %v1637_v45  ;;  %v913_v45 = vmul.f32 1.442695, %v894_v51  ;;  %v1751_v58 = vadd.f32 1.0, %v463_v21  ;;  %v1262_v28 = vpop.eup %1261  ;;  %vm662_vm3 = vweird.f32 %v1260_v12 }
  0xf3   :  { %v766_v48 = vmul.f32 %v750_v54, %v1722_v8  ;;  %v658_v24 = vsub.f32 1.0, %v657_v20  ;;  %v869_v26 = vmul.f32 %v853_v22, %v1679_v62  ;;  %v471_v30 = vmul.f32 0.3275911, %v1747_v25 }
  0xf4   :  { %v1021_v53 = vpack.c.bf16 %v1005_v9, %v1005_v9  ;;  %v437_v34 = vsel %vm421_vm2, 1.0, %v1301_v50  ;;  %vm414_vm5 = vcmp.ge.f32.partialorder %v1621_v15, 0.0  ;;  %1263 = vrcp.f32 %v1751_v58 }
  0xf5   :  { %v782_v29 = vadd.f32 1.4214138, %v766_v48  ;;  %v659_v2 = vmul.f32 %v1260_v12, %v658_v24  ;;  %v949_v33 = vmul.f32 %v1262_v28, %v869_v26  ;;  %vm661_vm6 = vweird.f32 %v1694_v14 }
  0xf6   :  { %1038 = vst.msk [vmem:[%s2058_s4 + $0x8] sm:$0xf] %vm1035_vm4, %v1021_v53  ;;  %v902_v49 = vmul.f32 %v886_v11, %v1684_v40  ;;  %vm663_vm7 = vmor %vm661_vm6, %vm662_vm3  ;;  %v668_v18 = vor.u32 1.1754944e-38, %v667_v27  ;;  %v1762_v32 = vadd.f32 1.0, %v471_v30  ;;  %v348_v17 = vmul.f32 %v1474_v1, %v312_v56 }
  0xf7   :  { %v798_v62 = vmul.f32 %v782_v29, %v1722_v8  ;;  %v660_v35 = vadd.f32 %v1260_v12, %v659_v2  ;;  %v965_v36 = vsub.f32 1.0, %v949_v33  ;;  %1265 = vpow2.f32 %v913_v45 }
  0xf8   :  { %vm666_vm8 = vcmp.eq.f32.partialorder %v665_v23, 8.507059e+37  ;;  %v560_v14 = vand.u32 2147483647, %v1751_v58  ;;  %1267 = vrcp.f32 %v1762_v32  ;;  %v430_v40 = vsel %vm414_vm5, 1.0, %v1301_v50 }
  0xf9   :  { %v814_v38 = vadd.f32 -0.28449672, %v798_v62  ;;  %v664_v39 = vsel %vm663_vm7, %v1260_v12, %v660_v35  ;;  %v981_v47 = vmul.f32 %v965_v36, %v437_v34  ;;  %v562_v52 = vand.u32 2147483648, %v1751_v58 }
  0xfa   :  { %v1765_v41 = vsel %vm666_vm8, %v668_v18, %v664_v39  ;;  %v1264_v63 = vpop.eup %1263  ;;  %v929_v3 = vmul.f32 1.442695, %v902_v49  ;;  %v1776_v51 = vadd.f32 %v1479_v4, %v348_v17  ;;  %v332_v7 = vadd.f32 %v331_v46, %v282_v44  ;;  %v265_v17 = vpop.f32.mrf.mxu0 }
  0xfb   :  { %v830_v57 = vmul.f32 %v814_v38, %v1722_v8  ;;  %v742_v59 = vmul.f32 1.0614054, %v1765_v41  ;;  %v997_v0 = vadd.f32 1.0, %v981_v47  ;;  %v552_v12 = vmul.f32 %v1264_v63, %v1751_v58  ;;  %v314_v38 = vpop.f32.mrf.mxu1 }
  0xfc   :  { %v879_v15 = vsub.f32 0.0, %v1727_v31  ;;  %vm556_vm9 = vweird.f32 %v1751_v58  ;;  %vm1782_vm10 = vcmp.eq.f32.partialorder %v560_v14, 8.507059e+37  ;;  %v887_v54 = vsub.f32 0.0, %v1747_v25 }
  0xfd   :  { %v846_v9 = vadd.f32 0.2548296, %v830_v57  ;;  %v758_v10 = vadd.f32 -1.4531521, %v742_v59  ;;  %v1013_v19 = vmul.f32 %v997_v0, %v1720_v5  ;;  %v1266_v45 = vpop.eup %1265  ;;  %v553_v55 = vsub.f32 1.0, %v552_v12 }
  0xfe   :  { %v563_v22 = vor.u32 1.1754944e-38, %v562_v52  ;;  %v1268_v23 = vpop.eup %1267  ;;  %vm557_vm11 = vweird.f32 %v1264_v63  ;;  %v1790_v5 = vmul.f32 0.70710677, %v1776_v51  ;;  %v356_v48 = vmul.f32 %v1474_v1, %v332_v7 }
  0xff   :  { %v862_v20 = vmul.f32 %v846_v9, %v1722_v8  ;;  %v774_v16 = vmul.f32 %v758_v10, %v1765_v41  ;;  %v1029_v21 = vpack.c.bf16 %v1013_v19, %v1013_v19  ;;  %v554_v26 = vmul.f32 %v1264_v63, %v553_v55  ;;  %vm558_vm12 = vmor %vm556_vm9, %vm557_vm11 }
 0x100   :  { %v672_v27 = vmul.f32 %v1268_v23, %v1762_v32  ;;  %1269 = vpow2.f32 %v929_v3  ;;  %v895_v8 = vmul.f32 %v879_v15, %v1727_v31  ;;  %v680_v56 = vand.u32 2147483647, %v1762_v32 }
 0x101   :  { %v942_v24 = vmul.f32 %v1266_v45, %v862_v20  ;;  %v790_v11 = vadd.f32 1.4214138, %v774_v16  ;;  %1046 = vst.msk [vmem:[%s2058_s4 + $0x28] sm:$0xf] %vm1035_vm4, %v1029_v21  ;;  %v1801_v28 = vand.u32 2147483647, %v1790_v5  ;;  %v555_v30 = vadd.f32 %v1264_v63, %v554_v26 }
 0x102   :  { %v673_v34 = vsub.f32 1.0, %v672_v27  ;;  %vm677_vm13 = vweird.f32 %v1268_v23  ;;  %v682_v33 = vand.u32 2147483648, %v1762_v32  ;;  %v1810_v31 = vadd.f32 %v1479_v4, %v356_v48 }
 0x103   :  { %v958_v29 = vsub.f32 1.0, %v942_v24  ;;  %v806_v2 = vmul.f32 %v790_v11, %v1765_v41  ;;  %v464_v62 = vmul.f32 0.3275911, %v1801_v28  ;;  %v559_v36 = vsel %vm558_vm12, %v1264_v63, %v555_v30  ;;  %v334_v30 = vpop.f32.mrf.mxu3 }
 0x104   :  { %v674_v18 = vmul.f32 %v1268_v23, %v673_v34  ;;  %v1814_v39 = vsel %vm1782_vm10, %v563_v22, %v559_v36  ;;  %vm676_vm14 = vweird.f32 %v1762_v32  ;;  %vm1817_vm15 = vcmp.eq.f32.partialorder %v680_v56, 8.507059e+37 }
 0x105   :  { %v974_v35 = vmul.f32 %v958_v29, %v430_v40  ;;  %v822_v49 = vadd.f32 -0.28449672, %v806_v2  ;;  %v1821_v44 = vadd.f32 1.0, %v464_v62  ;;  %v735_v14 = vmul.f32 1.0614054, %v1814_v39  ;;  %vm678_vm0 = vmor %vm676_vm14, %vm677_vm13  ;;  %v285_v2 = vpop.f32.mrf.mxu2 }
 0x106   :  { %v675_v40 = vadd.f32 %v1268_v23, %v674_v18  ;;  %v1270_v57 = vpop.eup %1269  ;;  %v683_v59 = vor.u32 1.1754944e-38, %v682_v33  ;;  %v1828_v32 = vmul.f32 0.70710677, %v1810_v31  ;;  %v315_v52 = vadd.f32 %v314_v38, %v265_v17 }
 0x107   :  { %v990_v46 = vadd.f32 1.0, %v974_v35  ;;  %v838_v47 = vmul.f32 %v822_v49, %v1765_v41  ;;  %1271 = vrcp.f32 %v1821_v44  ;;  %v751_v3 = vadd.f32 -1.4531521, %v735_v14 }
 0x108   :  { %v679_v7 = vsel %vm678_vm0, %v1268_v23, %v675_v40  ;;  %v390_v9 = vmul.f32 0.5, %v1656_v6  ;;  %vm422_vm1 = vcmp.ge.f32.partialorder %v1672_v43, 0.0  ;;  %v915_v45 = vmul.f32 1.442695, %v895_v8 }
 0x109   :  { %v1006_v63 = vmul.f32 %v990_v46, %v1732_v13  ;;  %v854_v0 = vadd.f32 0.2548296, %v838_v47  ;;  %v1835_v10 = vsel %vm1817_vm15, %v683_v59, %v679_v7  ;;  %v767_v19 = vmul.f32 %v751_v3, %v1814_v39 }
 0x10a   :  { %v743_v53 = vmul.f32 1.0614054, %v1835_v10  ;;  %v903_v13 = vmul.f32 %v887_v54, %v1747_v25  ;;  %v1842_v20 = vand.u32 2147483647, %v1828_v32  ;;  %v349_v6 = vmul.f32 %v1474_v1, %v315_v52 }
 0x10b   :  { %v1022_v12 = vpack.c.bf16 %v1006_v63, %v1006_v63  ;;  %v870_v15 = vmul.f32 %v854_v0, %v1765_v41  ;;  %v783_v16 = vadd.f32 1.4214138, %v767_v19  ;;  %v438_v22 = vsel %vm422_vm1, 1.0, %v1301_v50 }
 0x10c   :  { %v759_v41 = vadd.f32 -1.4531521, %v743_v53  ;;  %v1851_v23 = vmul.f32 0.5, %v1697_v37  ;;  %vm415_vm2 = vcmp.ge.f32.partialorder %v1709_v60, 0.0  ;;  %v472_v25 = vmul.f32 0.3275911, %v1842_v20 }
 0x10d   :  { %1039 = vst.msk [vmem:[%s2058_s4 + $0xc] sm:$0xf] %vm1035_vm4, %v1022_v12  ;;  %v950_v43 = vmul.f32 %v1270_v57, %v870_v15  ;;  %v1272_v55 = vpop.eup %1271  ;;  %v799_v21 = vmul.f32 %v783_v16, %v1814_v39  ;;  %1273 = vpow2.f32 %v915_v45  ;;  %v931_v11 = vmul.f32 1.442695, %v903_v13 }
 0x10e   :  { %v775_v48 = vmul.f32 %v759_v41, %v1835_v10  ;;  %v567_v24 = vmul.f32 %v1272_v55, %v1821_v44  ;;  %v1858_v26 = vadd.f32 1.0, %v472_v25  ;;  %v1861_v27 = vadd.f32 %v1479_v4, %v349_v6 }
 0x10f   :  { %v966_v54 = vsub.f32 1.0, %v950_v43  ;;  %v815_v8 = vadd.f32 -0.28449672, %v799_v21  ;;  %vm572_vm3 = vweird.f32 %v1272_v55  ;;  %v575_v34 = vand.u32 2147483647, %v1821_v44 }
 0x110   :  { %v791_v56 = vadd.f32 1.4214138, %v775_v48  ;;  %v568_v29 = vsub.f32 1.0, %v567_v24  ;;  %v577_v33 = vand.u32 2147483648, %v1821_v44  ;;  %1275 = vrcp.f32 %v1858_v26  ;;  %v267_v48 = vpop.f32.mrf.mxu0  ;;  %v316_v24 = vpop.f32.mrf.mxu1 }
 0x111   :  { %v982_v37 = vmul.f32 %v966_v54, %v438_v22  ;;  %v831_v35 = vmul.f32 %v815_v8, %v1814_v39  ;;  %1277 = vpow2.f32 %v931_v11  ;;  %vm571_vm5 = vweird.f32 %v1821_v44  ;;  %v1903_v22 = vld [vmem:[%s2057_s3] ss:$0 sm:$0xff] }
 0x112   :  { %v807_v49 = vmul.f32 %v791_v56, %v1835_v10  ;;  %v569_v4 = vmul.f32 %v1272_v55, %v568_v29  ;;  %v1870_v36 = vmul.f32 0.70710677, %v1861_v27  ;;  %v335_v18 = vadd.f32 %v334_v30, %v285_v2  ;;  %vm573_vm6 = vmor %vm571_vm5, %vm572_vm3 }
 0x113   :  { %v998_v62 = vadd.f32 1.0, %v982_v37  ;;  %v847_v38 = vadd.f32 0.2548296, %v831_v35  ;;  %v1274_v47 = vpop.eup %1273  ;;  %vm576_vm7 = vcmp.eq.f32.partialorder %v575_v34, 8.507059e+37  ;;  %v578_v14 = vor.u32 1.1754944e-38, %v577_v33 }
 0x114   :  { %v823_v58 = vadd.f32 -0.28449672, %v807_v49  ;;  %v570_v46 = vadd.f32 %v1272_v55, %v569_v4  ;;  %v880_v40 = vsub.f32 0.0, %v1801_v28  ;;  %v1875_v57 = vand.u32 2147483647, %v1870_v36 }
 0x115   :  { %v1014_v17 = vmul.f32 %v998_v62, %v390_v9  ;;  %v863_v44 = vmul.f32 %v847_v38, %v1814_v39  ;;  %v431_v3 = vsel %vm415_vm2, 1.0, %v1301_v50  ;;  %v357_v12 = vmul.f32 %v1474_v1, %v335_v18 }
 0x116   :  { %v839_v52 = vmul.f32 %v823_v58, %v1835_v10  ;;  %v574_v63 = vsel %vm573_vm6, %v1272_v55, %v570_v46  ;;  %v1276_v0 = vpop.eup %1275  ;;  %v465_v9 = vmul.f32 0.3275911, %v1875_v57  ;;  %vm423_vm8 = vcmp.ge.f32.partialorder %v1735_v61, 0.0  ;;  %v1300_v58 = vld [vmem:[%s2056_s2] ss:$0 sm:$0xff] }
 0x117   :  { %v1030_v59 = vpack.c.bf16 %v1014_v17, %v1014_v17  ;;  %v1882_v7 = vsel %vm576_vm7, %v578_v14, %v574_v63  ;;  %v943_v39 = vmul.f32 %v1274_v47, %v863_v44  ;;  %v687_v53 = vmul.f32 %v1276_v0, %v1858_v26  ;;  %v1278_v45 = vpop.eup %1277  ;;  %v336_v44 = vpop.f32.mrf.mxu3 }
 0x118   :  { %v855_v15 = vadd.f32 0.2548296, %v839_v52  ;;  %v736_v19 = vmul.f32 1.0614054, %v1882_v7  ;;  %v896_v60 = vmul.f32 %v880_v40, %v1801_v28  ;;  %v695_v13 = vand.u32 2147483647, %v1858_v26 }
 0x119   :  { %1047 = vst.msk [vmem:[%s2058_s4 + $0x2c] sm:$0xf] %vm1035_vm4, %v1030_v59  ;;  %v1895_v6 = vadd.f32 1.0, %v465_v9  ;;  %v959_v1 = vsub.f32 1.0, %v943_v39  ;;  %v688_v41 = vsub.f32 1.0, %v687_v53  ;;  %vm692_vm9 = vweird.f32 %v1276_v0  ;;  %v287_v59 = vpop.f32.mrf.mxu2 }
 0x11a   :  { %v871_v43 = vmul.f32 %v855_v15, %v1835_v10  ;;  %v752_v16 = vadd.f32 -1.4531521, %v736_v19  ;;  %v697_v55 = vand.u32 2147483648, %v1858_v26  ;;  %v1906_v28 = vadd.f32 %v1903_v22, %v357_v12 }
 0x11b   :  { %1279 = vrcp.f32 %v1895_v6  ;;  %v975_v25 = vmul.f32 %v959_v1, %v431_v3  ;;  %v689_v10 = vmul.f32 %v1276_v0, %v688_v41  ;;  %v439_v11 = vsel %vm423_vm8, 1.0, %v1301_v50 }
 0x11c   :  { %v951_v54 = vmul.f32 %v1278_v45, %v871_v43  ;;  %v768_v21 = vmul.f32 %v752_v16, %v1882_v7  ;;  %v917_v37 = vmul.f32 1.442695, %v896_v60  ;;  %vm691_vm10 = vweird.f32 %v1858_v26 }
 0x11d   :  { %v888_v8 = vsub.f32 0.0, %v1842_v20  ;;  %v991_v56 = vadd.f32 1.0, %v975_v25  ;;  %v690_v30 = vadd.f32 %v1276_v0, %v689_v10  ;;  %vm693_vm11 = vmor %vm691_vm10, %vm692_vm9  ;;  %vm696_vm12 = vcmp.eq.f32.partialorder %v695_v13, 8.507059e+37 }
 0x11e   :  { %v967_v29 = vsub.f32 1.0, %v951_v54  ;;  %v784_v2 = vadd.f32 1.4214138, %v768_v21  ;;  %v698_v34 = vor.u32 1.1754944e-38, %v697_v55  ;;  %v1916_v33 = vmul.f32 0.70710677, %v1906_v28 }
 0x11f   :  { %v317_v62 = vadd.f32 %v316_v24, %v267_v48  ;;  %v1007_v61 = vmul.f32 %v991_v56, %v1851_v23  ;;  %v694_v26 = vsel %vm693_vm11, %v1276_v0, %v690_v30  ;;  %v391_v18 = vmul.f32 0.5, %v1717_v42 }
 0x120   :  { %v983_v35 = vmul.f32 %v967_v29, %v439_v11  ;;  %v800_v49 = vmul.f32 %v784_v2, %v1882_v7  ;;  %v1921_v17 = vsel %vm696_vm12, %v698_v34, %v694_v26  ;;  %v1924_v38 = vand.u32 2147483647, %v1916_v33 }
 0x121   :  { %v1280_v4 = vpop.eup %1279  ;;  %v350_v46 = vmul.f32 %v1300_v58, %v317_v62  ;;  %v1023_v47 = vpack.c.bf16 %v1007_v61, %v1007_v61  ;;  %v744_v40 = vmul.f32 1.0614054, %v1921_v17  ;;  %1281 = vpow2.f32 %v917_v37 }
 0x122   :  { %v999_v14 = vadd.f32 1.0, %v983_v35  ;;  %v816_v23 = vadd.f32 -0.28449672, %v800_v49  ;;  %v904_v42 = vmul.f32 %v888_v8, %v1842_v20  ;;  %v582_v52 = vmul.f32 %v1280_v4, %v1895_v6 }
 0x123   :  { %v473_v63 = vmul.f32 0.3275911, %v1924_v38  ;;  %1040 = vst.msk [vmem:[%s2058_s4 + $0x10] sm:$0xf] %vm1035_vm4, %v1023_v47  ;;  %v760_v9 = vadd.f32 -1.4531521, %v744_v40  ;;  %vm586_vm13 = vweird.f32 %v1895_v6  ;;  %v1942_v20 = vadd.f32 %v1903_v22, %v350_v46 }
 0x124   :  { %v1015_v0 = vmul.f32 %v999_v14, %v391_v18  ;;  %v832_v3 = vmul.f32 %v816_v23, %v1882_v7  ;;  %v583_v12 = vsub.f32 1.0, %v582_v52  ;;  %v337_v15 = vadd.f32 %v336_v44, %v287_v59 }
 0x125   :  { %v1939_v39 = vadd.f32 1.0, %v473_v63  ;;  %v776_v45 = vmul.f32 %v760_v9, %v1921_v17  ;;  %v592_v60 = vand.u32 2147483648, %v1895_v6  ;;  %vm587_vm14 = vweird.f32 %v1280_v4 }
 0x126   :  { %v1031_v19 = vpack.c.bf16 %v1015_v0, %v1015_v0  ;;  %v848_v53 = vadd.f32 0.2548296, %v832_v3  ;;  %v584_v13 = vmul.f32 %v1280_v4, %v583_v12  ;;  %v590_v1 = vand.u32 2147483647, %v1895_v6  ;;  %vm588_vm0 = vmor %vm586_vm13, %vm587_vm14 }
 0x127   :  { %1283 = vrcp.f32 %v1939_v39  ;;  %vm416_vm15 = vcmp.ge.f32.partialorder %v1790_v5, 0.0  ;;  %v792_v16 = vadd.f32 1.4214138, %v776_v45  ;;  %v1282_v41 = vpop.eup %1281  ;;  %v933_v55 = vmul.f32 1.442695, %v904_v42 }
 0x128   :  { %1048 = vst.msk [vmem:[%s2058_s4 + $0x30] sm:$0xf] %vm1035_vm4, %v1031_v19  ;;  %v864_v43 = vmul.f32 %v848_v53, %v1882_v7  ;;  %v585_v25 = vadd.f32 %v1280_v4, %v584_v13  ;;  %v1955_v54 = vmul.f32 0.70710677, %v1942_v20  ;;  %v358_v21 = vmul.f32 %v1300_v58, %v337_v15 }
 0x129   :  { %v808_v48 = vmul.f32 %v792_v16, %v1921_v17  ;;  %v593_v24 = vor.u32 1.1754944e-38, %v592_v60  ;;  %vm591_vm1 = vcmp.eq.f32.partialorder %v590_v1, 8.507059e+37  ;;  %v881_v37 = vsub.f32 0.0, %v1875_v57 }
 0x12a   :  { %v944_v10 = vmul.f32 %v1282_v41, %v864_v43  ;;  %v589_v11 = vsel %vm588_vm0, %v1280_v4, %v585_v25  ;;  %v1962_v7 = vand.u32 2147483647, %v1955_v54  ;;  %v432_v8 = vsel %vm416_vm15, 1.0, %v1301_v50 }
 0x12b   :  { %v824_v29 = vadd.f32 -0.28449672, %v808_v48  ;;  %v1967_v2 = vsel %vm591_vm1, %v593_v24, %v589_v11  ;;  %1285 = vpow2.f32 %v933_v55  ;;  %v1972_v62 = vadd.f32 %v1903_v22, %v358_v21 }
 0x12c   :  { %v960_v56 = vsub.f32 1.0, %v944_v10  ;;  %v737_v6 = vmul.f32 1.0614054, %v1967_v2  ;;  %v466_v34 = vmul.f32 0.3275911, %v1962_v7  ;;  %v384_v5 = vmul.f32 0.5, %v1776_v51 }
 0x12d   :  { %v1284_v30 = vpop.eup %1283  ;;  %v840_v35 = vmul.f32 %v824_v29, %v1921_v17  ;;  %v897_v4 = vmul.f32 %v881_v37, %v1875_v57  ;;  %v710_v14 = vand.u32 2147483647, %v1939_v39  ;;  %v712_v23 = vand.u32 2147483648, %v1939_v39 }
 0x12e   :  { %v976_v61 = vmul.f32 %v960_v56, %v432_v8  ;;  %v702_v49 = vmul.f32 %v1284_v30, %v1939_v39  ;;  %v753_v26 = vadd.f32 -1.4531521, %v737_v6  ;;  %v1978_v18 = vadd.f32 1.0, %v466_v34 }
 0x12f   :  { %v856_v46 = vadd.f32 0.2548296, %v840_v35  ;;  %v1985_v40 = vmul.f32 0.70710677, %v1972_v62  ;;  %vm707_vm2 = vweird.f32 %v1284_v30  ;;  %vm424_vm3 = vcmp.ge.f32.partialorder %v1828_v32, 0.0 }
 0x130   :  { %v992_v58 = vadd.f32 1.0, %v976_v61  ;;  %v703_v47 = vsub.f32 1.0, %v702_v49  ;;  %v769_v22 = vmul.f32 %v753_v26, %v1967_v2  ;;  %1287 = vrcp.f32 %v1978_v18 }
 0x131   :  { %v872_v59 = vmul.f32 %v856_v46, %v1921_v17  ;;  %v1286_v44 = vpop.eup %1285  ;;  %v919_v52 = vmul.f32 1.442695, %v897_v4  ;;  %vm706_vm5 = vweird.f32 %v1939_v39  ;;  %v713_v12 = vor.u32 1.1754944e-38, %v712_v23 }
 0x132   :  { %v1008_v51 = vmul.f32 %v992_v58, %v384_v5  ;;  %v704_v57 = vmul.f32 %v1284_v30, %v703_v47  ;;  %v785_v42 = vadd.f32 1.4214138, %v769_v22  ;;  %vm708_vm6 = vmor %vm706_vm5, %vm707_vm2  ;;  %v1992_v15 = vand.u32 2147483647, %v1985_v40 }
 0x133   :  { %v952_v0 = vmul.f32 %v1286_v44, %v872_v59  ;;  %vm711_vm7 = vcmp.eq.f32.partialorder %v710_v14, 8.507059e+37  ;;  %v889_v53 = vsub.f32 0.0, %v1924_v38  ;;  %v440_v39 = vsel %vm424_vm3, 1.0, %v1301_v50 }
 0x134   :  { %v1024_v63 = vpack.c.bf16 %v1008_v51, %v1008_v51  ;;  %v705_v3 = vadd.f32 %v1284_v30, %v704_v57  ;;  %v801_v9 = vmul.f32 %v785_v42, %v1967_v2  ;;  %v474_v1 = vmul.f32 0.3275911, %v1992_v15 }
 0x135   :  { %v968_v17 = vsub.f32 1.0, %v952_v0  ;;  %1289 = vpow2.f32 %v919_v52  ;;  %v392_v55 = vmul.f32 0.5, %v1810_v31  ;;  %v905_v32 = vmul.f32 %v889_v53, %v1924_v38 }
 0x136   :  { %1041 = vst.msk [vmem:[%s2058_s4 + $0x14] sm:$0xf] %vm1035_vm4, %v1024_v63  ;;  %v709_v19 = vsel %vm708_vm6, %v1284_v30, %v705_v3  ;;  %v1288_v45 = vpop.eup %1287  ;;  %v817_v60 = vadd.f32 -0.28449672, %v801_v9  ;;  %v2006_v21 = vadd.f32 1.0, %v474_v1  ;;  %v607_v8 = vand.u32 2147483648, %v1978_v18 }
 0x137   :  { %v714_v13 = vsel %vm711_vm7, %v713_v12, %v709_v19  ;;  %v984_v43 = vmul.f32 %v968_v17, %v440_v39  ;;  %v597_v41 = vmul.f32 %v1288_v45, %v1978_v18  ;;  %v605_v37 = vand.u32 2147483647, %v1978_v18 }
 0x138   :  { %v745_v16 = vmul.f32 1.0614054, %v714_v13  ;;  %v833_v25 = vmul.f32 %v817_v60, %v1967_v2  ;;  %1291 = vrcp.f32 %v2006_v21  ;;  %vm602_vm8 = vweird.f32 %v1288_v45 }
 0x139   :  { %v1000_v10 = vadd.f32 1.0, %v984_v43  ;;  %v598_v24 = vsub.f32 1.0, %v597_v41  ;;  %vm601_vm9 = vweird.f32 %v1978_v18  ;;  %vm417_vm10 = vcmp.ge.f32.partialorder %v1870_v36, 0.0 }
 0x13a   :  { %v761_v48 = vadd.f32 -1.4531521, %v745_v16  ;;  %v849_v11 = vadd.f32 0.2548296, %v833_v25  ;;  %v935_v49 = vmul.f32 1.442695, %v905_v32  ;;  %vm603_vm11 = vmor %vm601_vm9, %vm602_vm8  ;;  %vm721_vm14 = vweird.f32 %v2006_v21 }
 0x13b   :  { %v1016_v56 = vmul.f32 %v1000_v10, %v392_v55  ;;  %v599_v30 = vmul.f32 %v1288_v45, %v598_v24  ;;  %v1290_v6 = vpop.eup %1289  ;;  %v608_v5 = vor.u32 1.1754944e-38, %v607_v8  ;;  %vm606_vm12 = vcmp.eq.f32.partialorder %v605_v37, 8.507059e+37 }
 0x13c   :  { %v777_v29 = vmul.f32 %v761_v48, %v714_v13  ;;  %v865_v31 = vmul.f32 %v849_v11, %v1967_v2  ;;  %v882_v47 = vsub.f32 0.0, %v1962_v7  ;;  %v433_v18 = vsel %vm417_vm10, 1.0, %v1301_v50 }
 0x13d   :  { %v1032_v34 = vpack.c.bf16 %v1016_v56, %v1016_v56  ;;  %v600_v35 = vadd.f32 %v1288_v45, %v599_v30  ;;  %1293 = vpow2.f32 %v935_v49  ;;  %v385_v51 = vmul.f32 0.5, %v1861_v27 }
 0x13e   :  { %v793_v61 = vadd.f32 1.4214138, %v777_v29  ;;  %v945_v38 = vmul.f32 %v1290_v6, %v865_v31  ;;  %v1292_v2 = vpop.eup %1291  ;;  %v898_v52 = vmul.f32 %v882_v47, %v1962_v7  ;;  %v725_v63 = vand.u32 2147483647, %v2006_v21 }
 0x13f   :  { %1049 = vst.msk [vmem:[%s2058_s4 + $0x34] sm:$0xf] %vm1035_vm4, %v1032_v34  ;;  %v604_v4 = vsel %vm603_vm11, %v1288_v45, %v600_v35  ;;  %v717_v22 = vmul.f32 %v1292_v2, %v2006_v21  ;;  %v727_v0 = vand.u32 2147483648, %v2006_v21  ;;  %vm722_vm13 = vweird.f32 %v1292_v2 }
 0x140   :  { %v809_v26 = vmul.f32 %v793_v61, %v714_v13  ;;  %v961_v58 = vsub.f32 1.0, %v945_v38  ;;  %v609_v46 = vsel %vm606_vm12, %v608_v5, %v604_v4  ;;  %vm425_vm15 = vcmp.ge.f32.partialorder %v1916_v33, 0.0  ;;  %vm723_vm0 = vmor %vm721_vm14, %vm722_vm13 }
 0x141   :  { %v738_v14 = vmul.f32 1.0614054, %v609_v46  ;;  %v718_v44 = vsub.f32 1.0, %v717_v22  ;;  %v921_v60 = vmul.f32 1.442695, %v898_v52  ;;  %v728_v7 = vor.u32 1.1754944e-38, %v727_v0 }
 0x142   :  { %v825_v36 = vadd.f32 -0.28449672, %v809_v26  ;;  %v977_v23 = vmul.f32 %v961_v58, %v433_v18  ;;  %vm726_vm1 = vcmp.eq.f32.partialorder %v725_v63, 8.507059e+37  ;;  %v890_v41 = vsub.f32 0.0, %v1992_v15 }
 0x143   :  { %v754_v57 = vadd.f32 -1.4531521, %v738_v14  ;;  %v719_v12 = vmul.f32 %v1292_v2, %v718_v44  ;;  %v1294_v27 = vpop.eup %1293  ;;  %v441_v33 = vsel %vm425_vm15, 1.0, %v1301_v50  ;;  %1295 = vpow2.f32 %v921_v60 }
 0x144   :  { %v841_v59 = vmul.f32 %v825_v36, %v714_v13  ;;  %v993_v42 = vadd.f32 1.0, %v977_v23  ;;  %v906_v24 = vmul.f32 %v890_v41, %v1992_v15  ;;  %v393_v11 = vmul.f32 0.5, %v1906_v28 }
 0x145   :  { %v770_v9 = vmul.f32 %v754_v57, %v609_v46  ;;  %v720_v45 = vadd.f32 %v1292_v2, %v719_v12  ;;  %vm418_vm2 = vcmp.ge.f32.partialorder %v1955_v54, 0.0  ;;  %v386_v4 = vmul.f32 0.5, %v1942_v20 }
 0x146   :  { %v857_v3 = vadd.f32 0.2548296, %v841_v59  ;;  %v1009_v17 = vmul.f32 %v993_v42, %v385_v51  ;;  %v937_v34 = vmul.f32 1.442695, %v906_v24  ;;  %v434_v49 = vsel %vm418_vm2, 1.0, %v1301_v50 }
 0x147   :  { %v786_v53 = vadd.f32 1.4214138, %v770_v9  ;;  %v724_v16 = vsel %vm723_vm0, %v1292_v2, %v720_v45  ;;  %vm426_vm3 = vcmp.ge.f32.partialorder %v1985_v40, 0.0  ;;  %v394_v20 = vmul.f32 0.5, %v1972_v62 }
 0x148   :  { %v873_v19 = vmul.f32 %v857_v3, %v714_v13  ;;  %v1025_v39 = vpack.c.bf16 %v1009_v17, %v1009_v17  ;;  %v729_v13 = vsel %vm726_vm1, %v728_v7, %v724_v16  ;;  %1297 = vpow2.f32 %v937_v34 }
 0x149   :  { %v802_v43 = vmul.f32 %v786_v53, %v609_v46  ;;  %v746_v21 = vmul.f32 1.0614054, %v729_v13  ;;  %v1296_v6 = vpop.eup %1295  ;;  %v442_v22 = vsel %vm426_vm3, 1.0, %v1301_v50 }
 0x14a   :  { %v953_v1 = vmul.f32 %v1294_v27, %v873_v19  ;;  %1042 = vst.msk [vmem:[%s2058_s4 + $0x18] sm:$0xf] %vm1035_vm4, %v1025_v39 }
 0x14b   :  { %v818_v25 = vadd.f32 -0.28449672, %v802_v43  ;;  %v762_v32 = vadd.f32 -1.4531521, %v746_v21 }
 0x14c   :  { %v969_v55 = vsub.f32 1.0, %v953_v1 }
 0x14d   :  { %v834_v48 = vmul.f32 %v818_v25, %v609_v46  ;;  %v778_v56 = vmul.f32 %v762_v32, %v729_v13 }
 0x14e   :  { %v985_v10 = vmul.f32 %v969_v55, %v441_v33  ;;  %v1298_v47 = vpop.eup %1297 }
 0x14f   :  { %v850_v8 = vadd.f32 0.2548296, %v834_v48  ;;  %v794_v31 = vadd.f32 1.4214138, %v778_v56 }
 0x150   :  { %v1001_v37 = vadd.f32 1.0, %v985_v10 }
 0x151   :  { %v866_v30 = vmul.f32 %v850_v8, %v609_v46  ;;  %v810_v38 = vmul.f32 %v794_v31, %v729_v13 }
 0x152   :  { %v1017_v29 = vmul.f32 %v1001_v37, %v393_v11 }
 0x153   :  { %v946_v35 = vmul.f32 %v1296_v6, %v866_v30  ;;  %v826_v28 = vadd.f32 -0.28449672, %v810_v38 }
 0x154   :  { %v1033_v61 = vpack.c.bf16 %v1017_v29, %v1017_v29 }
 0x155   :  { %v962_v15 = vsub.f32 1.0, %v946_v35  ;;  %v842_v26 = vmul.f32 %v826_v28, %v729_v13 }
 0x156   :  { %1050 = vst.msk [vmem:[%s2058_s4 + $0x38] sm:$0xf] %vm1035_vm4, %v1033_v61 }
 0x157   :  { %v978_v5 = vmul.f32 %v962_v15, %v434_v49  ;;  %v858_v58 = vadd.f32 0.2548296, %v842_v26 }
 0x159   :  { %v994_v2 = vadd.f32 1.0, %v978_v5  ;;  %v874_v54 = vmul.f32 %v858_v58, %v729_v13 }
 0x15b   :  { %v1010_v46 = vmul.f32 %v994_v2, %v386_v4  ;;  %v954_v36 = vmul.f32 %v1298_v47, %v874_v54 }
 0x15d   :  { %v1026_v18 = vpack.c.bf16 %v1010_v46, %v1010_v46  ;;  %v970_v14 = vsub.f32 1.0, %v954_v36 }
 0x15f   :  { %1043 = vst.msk [vmem:[%s2058_s4 + $0x1c] sm:$0xf] %vm1035_vm4, %v1026_v18  ;;  %v986_v23 = vmul.f32 %v970_v14, %v442_v22 }
 0x161   :  { %v1002_v51 = vadd.f32 1.0, %v986_v23 }
 0x163   :  { %v1018_v59 = vmul.f32 %v1002_v51, %v394_v20 }
 0x165   :  { %v1034_v57 = vpack.c.bf16 %v1018_v59, %v1018_v59 }
 0x167   :  { %1051 = vst.msk [vmem:[%s2058_s4 + $0x3c] sm:$0xf] %vm1035_vm4, %v1034_v57 }

</bundles_post_ra>
